<compile_context>
chip_gen: v5e
topology: v5e:2x2
jax: 0.10.0
libtpu: 0.0.40
codegen_flags: <defaults>
</compile_context>

<pallas_src>
import functools
import math

import jax
import jax.numpy as jnp
import numpy as np
from jax.experimental import pallas as pl
from jax.experimental.pallas import tpu as pltpu

LN_EPS = 1e-12  # BERT LayerNorm eps


def _layernorm_f32(x, gamma, beta):
    mean = jnp.mean(x, axis=-1, keepdims=True)
    var = jnp.mean(jnp.square(x - mean), axis=-1, keepdims=True)
    inv = jax.lax.rsqrt(var + LN_EPS)
    return (x - mean) * inv * gamma + beta


def _gelu_tanh(x):
    # tanh-based GELU (EUP-friendly); |err| vs exact erf-GELU < 3e-3.
    c = math.sqrt(2.0 / math.pi)
    return 0.5 * x * (1.0 + jnp.tanh(c * (x + 0.044715 * (x * x * x))))


# ----------------------------- Pallas kernel ------------------------------ #
def encoder_layer_kernel(xq_ref, xkv_ref, mask_ref,
                         wq_ref, bq_ref, wk_ref, bk_ref, wv_ref, bv_ref,
                         wao_ref, bao_ref, ln1g_ref, ln1b_ref,
                         wi_ref, bi_ref, wo_ref, bo_ref, ln2g_ref, ln2b_ref,
                         o_ref, *, num_heads, head_dim, mlp_chunk):
    xq = xq_ref[0]            # (TQ, H) f32 — query tile
    xkv = xkv_ref[0]          # (S,  H) f32 — full sequence for K/V
    mask = mask_ref[0]        # (1,  S) f32
    ext_mask = (1.0 - mask) * -10000.0   # get_extended_attention_mask (2-D case)

    TQ, H = xq.shape
    S = xkv.shape[0]
    nh, hd = num_heads, head_dim
    scale = 1.0 / math.sqrt(hd)

    xq_bf = xq.astype(jnp.bfloat16)
    xkv_bf = xkv.astype(jnp.bfloat16)

    # Heads become a leading batch dim: broadcast the activations once and do
    # one batched MXU contraction per projection (no per-head loop / concat /
    # lane slicing; no in-kernel reshapes or transposes).
    xq_b = jnp.broadcast_to(xq_bf, (nh, TQ, H))
    xkv_b = jnp.broadcast_to(xkv_bf, (nh, S, H))

    q = jnp.einsum("hqe,hed->hqd", xq_b, wq_ref[...],
                   preferred_element_type=jnp.float32) + bq_ref[...]   # (nh,TQ,hd)
    k = jnp.einsum("hse,hed->hsd", xkv_b, wk_ref[...],
                   preferred_element_type=jnp.float32) + bk_ref[...]   # (nh,S,hd)
    v = jnp.einsum("hse,hed->hsd", xkv_b, wv_ref[...],
                   preferred_element_type=jnp.float32) + bv_ref[...]   # (nh,S,hd)

    # --- BertSelfAttention (softmax in f32) ---
    scores = jnp.einsum("hqd,hkd->hqk", q.astype(jnp.bfloat16),
                        k.astype(jnp.bfloat16),
                        preferred_element_type=jnp.float32) * scale    # (nh,TQ,S)
    scores = scores + ext_mask[None]
    m = jnp.max(scores, axis=-1, keepdims=True)
    p = jnp.exp(scores - m)
    denom = jnp.sum(p, axis=-1, keepdims=True)
    p = p * pl.reciprocal(denom, approx=True)          # EUP reciprocal

    ctx = jnp.einsum("hqk,hkd->hqd", p.astype(jnp.bfloat16),
                     v.astype(jnp.bfloat16),
                     preferred_element_type=jnp.float32)               # (nh,TQ,hd)

    # --- BertSelfOutput: per-head output projection, summed over heads ---
    attn_parts = jnp.einsum("hqd,hde->hqe", ctx.astype(jnp.bfloat16), wao_ref[...],
                            preferred_element_type=jnp.float32)        # (nh,TQ,H)
    attn = attn_parts[0]
    for h in range(1, nh):                 # nh-1 cheap VPU adds (static unroll)
        attn = attn + attn_parts[h]
    attn = attn + bao_ref[...]
    attn = _layernorm_f32(attn + xq, ln1g_ref[...], ln1b_ref[...])     # (TQ,H) f32

    # --- BertIntermediate + BertOutput: MLP chunked over intermediate dim ---
    attn_bf = attn.astype(jnp.bfloat16)
    inter_size = wi_ref.shape[1]
    num_chunks = inter_size // mlp_chunk
    acc = jnp.zeros((TQ, H), jnp.float32)
    for c in range(num_chunks):
        lo = c * mlp_chunk
        inter = jnp.dot(attn_bf, wi_ref[:, lo:lo + mlp_chunk],
                        preferred_element_type=jnp.float32) + bi_ref[:, lo:lo + mlp_chunk]
        inter = _gelu_tanh(inter)
        acc = acc + jnp.dot(inter.astype(jnp.bfloat16),
                            wo_ref[lo:lo + mlp_chunk, :],
                            preferred_element_type=jnp.float32)
    out = acc + bo_ref[...]
    out = _layernorm_f32(out + attn, ln2g_ref[...], ln2b_ref[...])

    o_ref[0] = out


# ------------------------------- wrapper ----------------------------------- #
def _pick_tq(S):
    if S <= 256:
        return S
    for t in (256, 128, 64, 32, 16, 8):
        if S % t == 0:
            return t
    return S


def _pick_mlp_chunk(inter):
    for c in (1024, 768, 512, 384, 256):
        if inter > c and inter % c == 0:
            return c
    return inter


def transformer_encoder_layer(hidden_states, attention_mask, params, *, num_heads):
    B, S, H = hidden_states.shape
    hd = H // num_heads
    inter = params["W_i"].shape[-1]
    TQ = _pick_tq(S)
    n_q = S // TQ
    mlp_chunk = _pick_mlp_chunk(inter)

    x = hidden_states.astype(jnp.float32)
    if attention_mask is None:
        attention_mask = jnp.ones((B, S), jnp.float32)
    mask3 = attention_mask.reshape(B, 1, S).astype(jnp.float32)

    bf16 = jnp.bfloat16
    f32 = jnp.float32
    # Pre-split QKV / attention-output weights per head in the wrapper so the
    # kernel never reshapes or transposes; large matrices go to bf16.
    wq3 = params["W_q"].reshape(H, num_heads, hd).transpose(1, 0, 2).astype(bf16)
    wk3 = params["W_k"].reshape(H, num_heads, hd).transpose(1, 0, 2).astype(bf16)
    wv3 = params["W_v"].reshape(H, num_heads, hd).transpose(1, 0, 2).astype(bf16)
    bq3 = params["b_q"].reshape(1, num_heads, hd).transpose(1, 0, 2).astype(f32)
    bk3 = params["b_k"].reshape(1, num_heads, hd).transpose(1, 0, 2).astype(f32)
    bv3 = params["b_v"].reshape(1, num_heads, hd).transpose(1, 0, 2).astype(f32)
    wao3 = params["W_ao"].reshape(num_heads, hd, H).astype(bf16)

    weights = [
        wq3, bq3, wk3, bk3, wv3, bv3,
        wao3, params["b_ao"].astype(f32),
        params["ln1_g"].astype(f32), params["ln1_b"].astype(f32),
        params["W_i"].astype(bf16), params["b_i"].astype(f32),
        params["W_o"].astype(bf16), params["b_o"].astype(f32),
        params["ln2_g"].astype(f32), params["ln2_b"].astype(f32),
    ]

    # VMEM budget (rough): operand blocks (possibly double-buffered) + temps.
    weight_bytes = sum(int(np.prod(w.shape)) * w.dtype.itemsize for w in weights)
    operand_block_bytes = TQ * H * 4 + S * H * 4 + S * 4 + weight_bytes + TQ * H * 4
    act_bytes = 4 * (num_heads * TQ * H + 2 * num_heads * S * hd + num_heads * TQ * hd
                     + 2 * num_heads * TQ * S + num_heads * TQ * H
                     + TQ * mlp_chunk + 8 * TQ * H)
    vmem_limit = int(min(max(3 * operand_block_bytes + act_bytes + (4 << 20), 24 << 20),
                         56 << 20))

    flops = int(2 * B * (4 * S * H * H + 2 * S * S * H + 2 * S * H * inter))
    transcendentals = int(B * (num_heads * S * S + S * inter))
    bytes_accessed = int(2 * B * S * H * 4 + B * S * 4 + weight_bytes)
    cost = pl.CostEstimate(flops=flops, transcendentals=transcendentals,
                           bytes_accessed=bytes_accessed)

    kernel = functools.partial(encoder_layer_kernel, num_heads=num_heads,
                               head_dim=hd, mlp_chunk=mlp_chunk)

    def run(weight_mode):
        def w_spec(arr):
            nd = arr.ndim
            idx = lambda b, q, _nd=nd: (0,) * _nd   # grid-invariant block
            if weight_mode is None:
                return pl.BlockSpec(arr.shape, idx)
            return pl.BlockSpec(arr.shape, idx, pipeline_mode=weight_mode)

        in_specs = [
            pl.BlockSpec((1, TQ, H), lambda b, q: (b, q, 0)),   # query tile
            pl.BlockSpec((1, S, H), lambda b, q: (b, 0, 0)),    # full seq for K/V
            pl.BlockSpec((1, 1, S), lambda b, q: (b, 0, 0)),    # attention mask
        ] + [w_spec(w) for w in weights]

        grid_spec = pltpu.PrefetchScalarGridSpec(
            num_scalar_prefetch=0,
            grid=(B, n_q),
            in_specs=in_specs,
            out_specs=pl.BlockSpec((1, TQ, H), lambda b, q: (b, q, 0)),
        )
        out = pl.pallas_call(
            kernel,
            out_shape=jax.ShapeDtypeStruct((B, S, H), jnp.float32),
            grid_spec=grid_spec,
            compiler_params=pltpu.CompilerParams(
                dimension_semantics=("parallel", "parallel"),
                vmem_limit_bytes=vmem_limit),
            cost_estimate=cost,
        )(x, x, mask3, *weights)
        return jax.block_until_ready(out)

    try:
        # Weights are grid-invariant: single-buffer them to halve weight VMEM.
        return run(pl.Buffered(1))
    except Exception:
        # Fallback: default (double-buffered) pipelining for the weights.
        return run(None)


# --------------------------- pure-JAX reference ---------------------------- #
def reference_layer(x, attention_mask, params, num_heads):
    B, S, H = x.shape
    hd = H // num_heads

    def lin(t, w, b):
        return t @ w + b.reshape(-1)

    def split_heads(t):
        return t.reshape(B, S, num_heads, hd).transpose(0, 2, 1, 3)

    ext = (1.0 - attention_mask)[:, None, None, :] * -10000.0
    q = split_heads(lin(x, params["W_q"], params["b_q"]))
    k = split_heads(lin(x, params["W_k"], params["b_k"]))
    v = split_heads(lin(x, params["W_v"], params["b_v"]))
    scores = jnp.einsum("bhqd,bhkd->bhqk", q, k) / math.sqrt(hd) + ext
    probs = jax.nn.softmax(scores, axis=-1)
    ctx = jnp.einsum("bhqk,bhkd->bhqd", probs, v).transpose(0, 2, 1, 3).reshape(B, S, H)

    attn = lin(ctx, params["W_ao"], params["b_ao"])
    attn = _layernorm_f32(attn + x, params["ln1_g"], params["ln1_b"])
    inter = jax.nn.gelu(lin(attn, params["W_i"], params["b_i"]), approximate=False)
    out = lin(inter, params["W_o"], params["b_o"])
    out = _layernorm_f32(out + attn, params["ln2_g"], params["ln2_b"])
    return out


def make_params(key, hidden, intermediate):
    keys = jax.random.split(key, 8)

    def w(k, shape):
        return jax.random.normal(k, shape, jnp.float32) * 0.02

    params = {
        "W_q": w(keys[0], (hidden, hidden)),  "b_q": jnp.zeros((1, hidden), jnp.float32),
        "W_k": w(keys[1], (hidden, hidden)),  "b_k": jnp.zeros((1, hidden), jnp.float32),
        "W_v": w(keys[2], (hidden, hidden)),  "b_v": jnp.zeros((1, hidden), jnp.float32),
        "W_ao": w(keys[3], (hidden, hidden)), "b_ao": jnp.zeros((1, hidden), jnp.float32),
        "ln1_g": jnp.ones((1, hidden), jnp.float32),
        "ln1_b": jnp.zeros((1, hidden), jnp.float32),
        "W_i": w(keys[4], (hidden, intermediate)),
        "b_i": jnp.zeros((1, intermediate), jnp.float32),
        "W_o": w(keys[5], (intermediate, hidden)),
        "b_o": jnp.zeros((1, hidden), jnp.float32),
        "ln2_g": jnp.ones((1, hidden), jnp.float32),
        "ln2_b": jnp.zeros((1, hidden), jnp.float32),
    }
    # Give some biases nonzero deterministic values so the bias path is exercised.
    params["b_q"] = w(keys[6], (1, hidden))
    params["b_i"] = w(keys[7], (1, intermediate))
    return params


if __name__ == "__main__":
    B, S, H, NH, I = 2, 8, 32, 4, 64   # batch, seq, hidden, heads, intermediate

    key = jax.random.PRNGKey(0)
    k_x, k_p = jax.random.split(key)
    x = jax.random.normal(k_x, (B, S, H), jnp.float32)
    # attention_mask: second example has the last 2 tokens masked out
    attention_mask = jnp.array(
        [[1.0] * S, [1.0] * (S - 2) + [0.0] * 2], dtype=jnp.float32)
    params = make_params(k_p, H, I)

    out = transformer_encoder_layer(x, attention_mask, params, num_heads=NH)
    out = jax.block_until_ready(out)

    ref = reference_layer(x, attention_mask, params, NH)
    # bf16 matmuls + tanh-GELU + approx reciprocal => slightly looser tolerance.
    np.testing.assert_allclose(np.asarray(out), np.asarray(ref), atol=2e-2, rtol=2e-2)

    print("KERNEL_OK")
</pallas_src>

<mosaic_0001>
module attributes {stable_mosaic.version = 11 : i64} {
  func.func @encoder_layer_kernel(%arg0: i32, %arg1: i32, %arg2: memref<1x8x32xf32, #tpu.memory_space<vmem>>, %arg3: memref<1x8x32xf32, #tpu.memory_space<vmem>>, %arg4: memref<1x1x8xf32, #tpu.memory_space<vmem>>, %arg5: memref<4x32x8xbf16, #tpu.memory_space<vmem>>, %arg6: memref<4x1x8xf32, #tpu.memory_space<vmem>>, %arg7: memref<4x32x8xbf16, #tpu.memory_space<vmem>>, %arg8: memref<4x1x8xf32, #tpu.memory_space<vmem>>, %arg9: memref<4x32x8xbf16, #tpu.memory_space<vmem>>, %arg10: memref<4x1x8xf32, #tpu.memory_space<vmem>>, %arg11: memref<4x8x32xbf16, #tpu.memory_space<vmem>>, %arg12: memref<1x32xf32, #tpu.memory_space<vmem>>, %arg13: memref<1x32xf32, #tpu.memory_space<vmem>>, %arg14: memref<1x32xf32, #tpu.memory_space<vmem>>, %arg15: memref<32x64xbf16, #tpu.memory_space<vmem>>, %arg16: memref<1x64xf32, #tpu.memory_space<vmem>>, %arg17: memref<64x32xbf16, #tpu.memory_space<vmem>>, %arg18: memref<1x32xf32, #tpu.memory_space<vmem>>, %arg19: memref<1x32xf32, #tpu.memory_space<vmem>>, %arg20: memref<1x32xf32, #tpu.memory_space<vmem>>, %arg21: memref<1x8x32xf32, #tpu.memory_space<vmem>>) attributes {dimension_semantics = [#tpu.dimension_semantics<parallel>, #tpu.dimension_semantics<parallel>], iteration_bounds = array<i64: 2, 1>, scalar_prefetch = 0 : i64, scratch_operands = 0 : i64, tpu.core_type = #tpu.core_type<tc>, window_params = [{transform_indices = @transform_0, window_bounds = array<i64: 1, 8, 32>}, {transform_indices = @transform_1, window_bounds = array<i64: 1, 8, 32>}, {transform_indices = @transform_2, window_bounds = array<i64: 1, 1, 8>}, {pipeline_mode = #tpu.pipeline_mode<synchronous>, transform_indices = @transform_3, window_bounds = array<i64: 4, 32, 8>}, {pipeline_mode = #tpu.pipeline_mode<synchronous>, transform_indices = @transform_4, window_bounds = array<i64: 4, 1, 8>}, {pipeline_mode = #tpu.pipeline_mode<synchronous>, transform_indices = @transform_5, window_bounds = array<i64: 4, 32, 8>}, {pipeline_mode = #tpu.pipeline_mode<synchronous>, transform_indices = @transform_6, window_bounds = array<i64: 4, 1, 8>}, {pipeline_mode = #tpu.pipeline_mode<synchronous>, transform_indices = @transform_7, window_bounds = array<i64: 4, 32, 8>}, {pipeline_mode = #tpu.pipeline_mode<synchronous>, transform_indices = @transform_8, window_bounds = array<i64: 4, 1, 8>}, {pipeline_mode = #tpu.pipeline_mode<synchronous>, transform_indices = @transform_9, window_bounds = array<i64: 4, 8, 32>}, {pipeline_mode = #tpu.pipeline_mode<synchronous>, transform_indices = @transform_10, window_bounds = array<i64: 1, 32>}, {pipeline_mode = #tpu.pipeline_mode<synchronous>, transform_indices = @transform_11, window_bounds = array<i64: 1, 32>}, {pipeline_mode = #tpu.pipeline_mode<synchronous>, transform_indices = @transform_12, window_bounds = array<i64: 1, 32>}, {pipeline_mode = #tpu.pipeline_mode<synchronous>, transform_indices = @transform_13, window_bounds = array<i64: 32, 64>}, {pipeline_mode = #tpu.pipeline_mode<synchronous>, transform_indices = @transform_14, window_bounds = array<i64: 1, 64>}, {pipeline_mode = #tpu.pipeline_mode<synchronous>, transform_indices = @transform_15, window_bounds = array<i64: 64, 32>}, {pipeline_mode = #tpu.pipeline_mode<synchronous>, transform_indices = @transform_16, window_bounds = array<i64: 1, 32>}, {pipeline_mode = #tpu.pipeline_mode<synchronous>, transform_indices = @transform_17, window_bounds = array<i64: 1, 32>}, {pipeline_mode = #tpu.pipeline_mode<synchronous>, transform_indices = @transform_18, window_bounds = array<i64: 1, 32>}, {transform_indices = @transform_19, window_bounds = array<i64: 1, 8, 32>}]} {
    %c0 = arith.constant 0 : index
    %c0_0 = arith.constant 0 : index
    %c0_1 = arith.constant 0 : index
    %0 = vector.load %arg2[%c0, %c0_0, %c0_1] : memref<1x8x32xf32, #tpu.memory_space<vmem>>, vector<1x8x32xf32>
    %1 = vector.shape_cast %0 : vector<1x8x32xf32> to vector<8x32xf32>
    %c0_2 = arith.constant 0 : index
    %c0_3 = arith.constant 0 : index
    %c0_4 = arith.constant 0 : index
    %2 = vector.load %arg3[%c0_2, %c0_3, %c0_4] : memref<1x8x32xf32, #tpu.memory_space<vmem>>, vector<1x8x32xf32>
    %3 = vector.shape_cast %2 : vector<1x8x32xf32> to vector<8x32xf32>
    %c0_5 = arith.constant 0 : index
    %c0_6 = arith.constant 0 : index
    %c0_7 = arith.constant 0 : index
    %4 = vector.load %arg4[%c0_5, %c0_6, %c0_7] : memref<1x1x8xf32, #tpu.memory_space<vmem>>, vector<1x1x8xf32>
    %5 = vector.shape_cast %4 : vector<1x1x8xf32> to vector<1x8xf32>
    %cst = arith.constant 1.000000e+00 : f32
    %6 = vector.broadcast %cst : f32 to vector<1x8xf32>
    %7 = arith.subf %6, %5 : vector<1x8xf32>
    %cst_8 = arith.constant -1.000000e+04 : f32
    %8 = vector.broadcast %cst_8 : f32 to vector<1x8xf32>
    %9 = arith.mulf %7, %8 : vector<1x8xf32>
    %10 = arith.truncf %1 : vector<8x32xf32> to vector<8x32xbf16>
    %11 = arith.truncf %3 : vector<8x32xf32> to vector<8x32xbf16>
    %12 = vector.shape_cast %10 : vector<8x32xbf16> to vector<1x8x32xbf16>
    %13 = vector.broadcast %12 : vector<1x8x32xbf16> to vector<4x8x32xbf16>
    %14 = vector.shape_cast %11 : vector<8x32xbf16> to vector<1x8x32xbf16>
    %15 = vector.broadcast %14 : vector<1x8x32xbf16> to vector<4x8x32xbf16>
    %c0_9 = arith.constant 0 : index
    %c0_10 = arith.constant 0 : index
    %c0_11 = arith.constant 0 : index
    %16 = vector.load %arg5[%c0_9, %c0_10, %c0_11] : memref<4x32x8xbf16, #tpu.memory_space<vmem>>, vector<4x32x8xbf16>
    "tpu.trace_start"() <{level = 10 : i32, message = "hqe,hed->hqd"}> : () -> ()
    %cst_12 = arith.constant dense<0.000000e+00> : vector<4x8x8xf32>
    %17 = tpu.matmul %13, %16, %cst_12 {dimension_numbers = #tpu.dot_dimension_numbers<[2], [1], [1], [2], [0, 0, 0, 1, 1, 2], [0], [0]>} : vector<4x8x32xbf16>, vector<4x32x8xbf16>, vector<4x8x8xf32> -> vector<4x8x8xf32>
    "tpu.trace_stop"() : () -> ()
    %c0_13 = arith.constant 0 : index
    %c0_14 = arith.constant 0 : index
    %c0_15 = arith.constant 0 : index
    %18 = vector.load %arg6[%c0_13, %c0_14, %c0_15] : memref<4x1x8xf32, #tpu.memory_space<vmem>>, vector<4x1x8xf32>
    %19 = vector.broadcast %18 : vector<4x1x8xf32> to vector<4x8x8xf32>
    %20 = arith.addf %17, %19 : vector<4x8x8xf32>
    %c0_16 = arith.constant 0 : index
    %c0_17 = arith.constant 0 : index
    %c0_18 = arith.constant 0 : index
    %21 = vector.load %arg7[%c0_16, %c0_17, %c0_18] : memref<4x32x8xbf16, #tpu.memory_space<vmem>>, vector<4x32x8xbf16>
    "tpu.trace_start"() <{level = 10 : i32, message = "hse,hed->hsd"}> : () -> ()
    %cst_19 = arith.constant dense<0.000000e+00> : vector<4x8x8xf32>
    %22 = tpu.matmul %15, %21, %cst_19 {dimension_numbers = #tpu.dot_dimension_numbers<[2], [1], [1], [2], [0, 0, 0, 1, 1, 2], [0], [0]>} : vector<4x8x32xbf16>, vector<4x32x8xbf16>, vector<4x8x8xf32> -> vector<4x8x8xf32>
    "tpu.trace_stop"() : () -> ()
    %c0_20 = arith.constant 0 : index
    %c0_21 = arith.constant 0 : index
    %c0_22 = arith.constant 0 : index
    %23 = vector.load %arg8[%c0_20, %c0_21, %c0_22] : memref<4x1x8xf32, #tpu.memory_space<vmem>>, vector<4x1x8xf32>
    %24 = vector.broadcast %23 : vector<4x1x8xf32> to vector<4x8x8xf32>
    %25 = arith.addf %22, %24 : vector<4x8x8xf32>
    %c0_23 = arith.constant 0 : index
    %c0_24 = arith.constant 0 : index
    %c0_25 = arith.constant 0 : index
    %26 = vector.load %arg9[%c0_23, %c0_24, %c0_25] : memref<4x32x8xbf16, #tpu.memory_space<vmem>>, vector<4x32x8xbf16>
    "tpu.trace_start"() <{level = 10 : i32, message = "hse,hed->hsd"}> : () -> ()
    %cst_26 = arith.constant dense<0.000000e+00> : vector<4x8x8xf32>
    %27 = tpu.matmul %15, %26, %cst_26 {dimension_numbers = #tpu.dot_dimension_numbers<[2], [1], [1], [2], [0, 0, 0, 1, 1, 2], [0], [0]>} : vector<4x8x32xbf16>, vector<4x32x8xbf16>, vector<4x8x8xf32> -> vector<4x8x8xf32>
    "tpu.trace_stop"() : () -> ()
    %c0_27 = arith.constant 0 : index
    %c0_28 = arith.constant 0 : index
    %c0_29 = arith.constant 0 : index
    %28 = vector.load %arg10[%c0_27, %c0_28, %c0_29] : memref<4x1x8xf32, #tpu.memory_space<vmem>>, vector<4x1x8xf32>
    %29 = vector.broadcast %28 : vector<4x1x8xf32> to vector<4x8x8xf32>
    %30 = arith.addf %27, %29 : vector<4x8x8xf32>
    %31 = arith.truncf %20 : vector<4x8x8xf32> to vector<4x8x8xbf16>
    %32 = arith.truncf %25 : vector<4x8x8xf32> to vector<4x8x8xbf16>
    "tpu.trace_start"() <{level = 10 : i32, message = "hqd,hkd->hqk"}> : () -> ()
    %cst_30 = arith.constant dense<0.000000e+00> : vector<4x8x8xf32>
    %33 = tpu.matmul %31, %32, %cst_30 {dimension_numbers = #tpu.dot_dimension_numbers<[2], [2], [1], [1], [0, 0, 0, 1, 1, 1], [0], [0]>} : vector<4x8x8xbf16>, vector<4x8x8xbf16>, vector<4x8x8xf32> -> vector<4x8x8xf32>
    "tpu.trace_stop"() : () -> ()
    %cst_31 = arith.constant 0.353553385 : f32
    %34 = vector.broadcast %cst_31 : f32 to vector<4x8x8xf32>
    %35 = arith.mulf %33, %34 : vector<4x8x8xf32>
    %36 = vector.shape_cast %9 : vector<1x8xf32> to vector<1x1x8xf32>
    %37 = vector.broadcast %36 : vector<1x1x8xf32> to vector<4x8x8xf32>
    %38 = arith.addf %35, %37 : vector<4x8x8xf32>
    %cst_32 = arith.constant dense<0xFF800000> : vector<4x8xf32>
    %39 = vector.multi_reduction <maximumf>, %38, %cst_32 [2] : vector<4x8x8xf32> to vector<4x8xf32>
    %40 = vector.shape_cast %39 : vector<4x8xf32> to vector<4x8x1xf32>
    %41 = vector.broadcast %40 : vector<4x8x1xf32> to vector<4x8x8xf32>
    %42 = arith.subf %38, %41 : vector<4x8x8xf32>
    %43 = math.exp %42 : vector<4x8x8xf32>
    %cst_33 = arith.constant dense<0.000000e+00> : vector<4x8xf32>
    %44 = vector.multi_reduction <add>, %43, %cst_33 [2] : vector<4x8x8xf32> to vector<4x8xf32>
    %45 = vector.shape_cast %44 : vector<4x8xf32> to vector<4x8x1xf32>
    %46 = tpu.reciprocal %45 {approx = true} : vector<4x8x1xf32> -> vector<4x8x1xf32>
    %47 = vector.broadcast %46 : vector<4x8x1xf32> to vector<4x8x8xf32>
    %48 = arith.mulf %43, %47 : vector<4x8x8xf32>
    %49 = arith.truncf %48 : vector<4x8x8xf32> to vector<4x8x8xbf16>
    %50 = arith.truncf %30 : vector<4x8x8xf32> to vector<4x8x8xbf16>
    "tpu.trace_start"() <{level = 10 : i32, message = "hqk,hkd->hqd"}> : () -> ()
    %cst_34 = arith.constant dense<0.000000e+00> : vector<4x8x8xf32>
    %51 = tpu.matmul %49, %50, %cst_34 {dimension_numbers = #tpu.dot_dimension_numbers<[2], [1], [1], [2], [0, 0, 0, 1, 1, 2], [0], [0]>} : vector<4x8x8xbf16>, vector<4x8x8xbf16>, vector<4x8x8xf32> -> vector<4x8x8xf32>
    "tpu.trace_stop"() : () -> ()
    %52 = arith.truncf %51 : vector<4x8x8xf32> to vector<4x8x8xbf16>
    %c0_35 = arith.constant 0 : index
    %c0_36 = arith.constant 0 : index
    %c0_37 = arith.constant 0 : index
    %53 = vector.load %arg11[%c0_35, %c0_36, %c0_37] : memref<4x8x32xbf16, #tpu.memory_space<vmem>>, vector<4x8x32xbf16>
    "tpu.trace_start"() <{level = 10 : i32, message = "hqd,hde->hqe"}> : () -> ()
    %cst_38 = arith.constant dense<0.000000e+00> : vector<4x8x32xf32>
    %54 = tpu.matmul %52, %53, %cst_38 {dimension_numbers = #tpu.dot_dimension_numbers<[2], [1], [1], [2], [0, 0, 0, 1, 1, 2], [0], [0]>} : vector<4x8x8xbf16>, vector<4x8x32xbf16>, vector<4x8x32xf32> -> vector<4x8x32xf32>
    "tpu.trace_stop"() : () -> ()
    %55 = vector.extract_strided_slice %54 {offsets = [0, 0, 0], sizes = [1, 8, 32], strides = [1, 1, 1]} : vector<4x8x32xf32> to vector<1x8x32xf32>
    %56 = vector.shape_cast %55 : vector<1x8x32xf32> to vector<8x32xf32>
    %57 = vector.extract_strided_slice %54 {offsets = [1, 0, 0], sizes = [1, 8, 32], strides = [1, 1, 1]} : vector<4x8x32xf32> to vector<1x8x32xf32>
    %58 = vector.shape_cast %57 : vector<1x8x32xf32> to vector<8x32xf32>
    %59 = arith.addf %56, %58 : vector<8x32xf32>
    %60 = vector.extract_strided_slice %54 {offsets = [2, 0, 0], sizes = [1, 8, 32], strides = [1, 1, 1]} : vector<4x8x32xf32> to vector<1x8x32xf32>
    %61 = vector.shape_cast %60 : vector<1x8x32xf32> to vector<8x32xf32>
    %62 = arith.addf %59, %61 : vector<8x32xf32>
    %63 = vector.extract_strided_slice %54 {offsets = [3, 0, 0], sizes = [1, 8, 32], strides = [1, 1, 1]} : vector<4x8x32xf32> to vector<1x8x32xf32>
    %64 = vector.shape_cast %63 : vector<1x8x32xf32> to vector<8x32xf32>
    %65 = arith.addf %62, %64 : vector<8x32xf32>
    %c0_39 = arith.constant 0 : index
    %c0_40 = arith.constant 0 : index
    %66 = vector.load %arg12[%c0_39, %c0_40] : memref<1x32xf32, #tpu.memory_space<vmem>>, vector<1x32xf32>
    %67 = vector.broadcast %66 : vector<1x32xf32> to vector<8x32xf32>
    %68 = arith.addf %65, %67 : vector<8x32xf32>
    %69 = arith.addf %68, %1 : vector<8x32xf32>
    %c0_41 = arith.constant 0 : index
    %c0_42 = arith.constant 0 : index
    %70 = vector.load %arg13[%c0_41, %c0_42] : memref<1x32xf32, #tpu.memory_space<vmem>>, vector<1x32xf32>
    %c0_43 = arith.constant 0 : index
    %c0_44 = arith.constant 0 : index
    %71 = vector.load %arg14[%c0_43, %c0_44] : memref<1x32xf32, #tpu.memory_space<vmem>>, vector<1x32xf32>
    %cst_45 = arith.constant dense<0.000000e+00> : vector<8xf32>
    %72 = vector.multi_reduction <add>, %69, %cst_45 [1] : vector<8x32xf32> to vector<8xf32>
    %73 = vector.shape_cast %72 : vector<8xf32> to vector<8x1xf32>
    %cst_46 = arith.constant 3.200000e+01 : f32
    %74 = vector.broadcast %cst_46 : f32 to vector<8x1xf32>
    %75 = arith.divf %73, %74 : vector<8x1xf32>
    %76 = vector.broadcast %75 : vector<8x1xf32> to vector<8x32xf32>
    %77 = arith.subf %69, %76 : vector<8x32xf32>
    %78 = arith.mulf %77, %77 : vector<8x32xf32>
    %cst_47 = arith.constant dense<0.000000e+00> : vector<8xf32>
    %79 = vector.multi_reduction <add>, %78, %cst_47 [1] : vector<8x32xf32> to vector<8xf32>
    %80 = vector.shape_cast %79 : vector<8xf32> to vector<8x1xf32>
    %cst_48 = arith.constant 3.200000e+01 : f32
    %81 = vector.broadcast %cst_48 : f32 to vector<8x1xf32>
    %82 = arith.divf %80, %81 : vector<8x1xf32>
    %cst_49 = arith.constant 9.99999996E-13 : f32
    %83 = vector.broadcast %cst_49 : f32 to vector<8x1xf32>
    %84 = arith.addf %82, %83 : vector<8x1xf32>
    %85 = math.rsqrt %84 : vector<8x1xf32>
    %86 = vector.broadcast %75 : vector<8x1xf32> to vector<8x32xf32>
    %87 = arith.subf %69, %86 : vector<8x32xf32>
    %88 = vector.broadcast %85 : vector<8x1xf32> to vector<8x32xf32>
    %89 = arith.mulf %87, %88 : vector<8x32xf32>
    %90 = vector.broadcast %70 : vector<1x32xf32> to vector<8x32xf32>
    %91 = arith.mulf %89, %90 : vector<8x32xf32>
    %92 = vector.broadcast %71 : vector<1x32xf32> to vector<8x32xf32>
    %93 = arith.addf %91, %92 : vector<8x32xf32>
    %94 = arith.truncf %93 : vector<8x32xf32> to vector<8x32xbf16>
    %cst_50 = arith.constant 0.000000e+00 : f32
    %95 = vector.broadcast %cst_50 : f32 to vector<8x32xf32>
    %c0_51 = arith.constant 0 : index
    %c0_52 = arith.constant 0 : index
    %96 = vector.load %arg15[%c0_51, %c0_52] : memref<32x64xbf16, #tpu.memory_space<vmem>>, vector<32x64xbf16>
    %cst_53 = arith.constant dense<0.000000e+00> : vector<8x64xf32>
    %97 = tpu.matmul %94, %96, %cst_53 {dimension_numbers = #tpu.dot_dimension_numbers<[1], [0], [0], [1], [0, 0, 1, 1], [], []>} : vector<8x32xbf16>, vector<32x64xbf16>, vector<8x64xf32> -> vector<8x64xf32>
    %c0_54 = arith.constant 0 : index
    %c0_55 = arith.constant 0 : index
    %98 = vector.load %arg16[%c0_54, %c0_55] : memref<1x64xf32, #tpu.memory_space<vmem>>, vector<1x64xf32>
    %99 = vector.broadcast %98 : vector<1x64xf32> to vector<8x64xf32>
    %100 = arith.addf %97, %99 : vector<8x64xf32>
    %cst_56 = arith.constant 5.000000e-01 : f32
    %101 = vector.broadcast %cst_56 : f32 to vector<8x64xf32>
    %102 = arith.mulf %101, %100 : vector<8x64xf32>
    %103 = arith.mulf %100, %100 : vector<8x64xf32>
    %104 = arith.mulf %103, %100 : vector<8x64xf32>
    %cst_57 = arith.constant 4.471500e-02 : f32
    %105 = vector.broadcast %cst_57 : f32 to vector<8x64xf32>
    %106 = arith.mulf %105, %104 : vector<8x64xf32>
    %107 = arith.addf %100, %106 : vector<8x64xf32>
    %cst_58 = arith.constant 0.797884583 : f32
    %108 = vector.broadcast %cst_58 : f32 to vector<8x64xf32>
    %109 = arith.mulf %108, %107 : vector<8x64xf32>
    %110 = math.tanh %109 : vector<8x64xf32>
    %cst_59 = arith.constant 1.000000e+00 : f32
    %111 = vector.broadcast %cst_59 : f32 to vector<8x64xf32>
    %112 = arith.addf %111, %110 : vector<8x64xf32>
    %113 = arith.mulf %102, %112 : vector<8x64xf32>
    %114 = arith.truncf %113 : vector<8x64xf32> to vector<8x64xbf16>
    %c0_60 = arith.constant 0 : index
    %c0_61 = arith.constant 0 : index
    %115 = vector.load %arg17[%c0_60, %c0_61] : memref<64x32xbf16, #tpu.memory_space<vmem>>, vector<64x32xbf16>
    %cst_62 = arith.constant dense<0.000000e+00> : vector<8x32xf32>
    %116 = tpu.matmul %114, %115, %cst_62 {dimension_numbers = #tpu.dot_dimension_numbers<[1], [0], [0], [1], [0, 0, 1, 1], [], []>} : vector<8x64xbf16>, vector<64x32xbf16>, vector<8x32xf32> -> vector<8x32xf32>
    %117 = arith.addf %95, %116 : vector<8x32xf32>
    %c0_63 = arith.constant 0 : index
    %c0_64 = arith.constant 0 : index
    %118 = vector.load %arg18[%c0_63, %c0_64] : memref<1x32xf32, #tpu.memory_space<vmem>>, vector<1x32xf32>
    %119 = vector.broadcast %118 : vector<1x32xf32> to vector<8x32xf32>
    %120 = arith.addf %117, %119 : vector<8x32xf32>
    %121 = arith.addf %120, %93 : vector<8x32xf32>
    %c0_65 = arith.constant 0 : index
    %c0_66 = arith.constant 0 : index
    %122 = vector.load %arg19[%c0_65, %c0_66] : memref<1x32xf32, #tpu.memory_space<vmem>>, vector<1x32xf32>
    %c0_67 = arith.constant 0 : index
    %c0_68 = arith.constant 0 : index
    %123 = vector.load %arg20[%c0_67, %c0_68] : memref<1x32xf32, #tpu.memory_space<vmem>>, vector<1x32xf32>
    %cst_69 = arith.constant dense<0.000000e+00> : vector<8xf32>
    %124 = vector.multi_reduction <add>, %121, %cst_69 [1] : vector<8x32xf32> to vector<8xf32>
    %125 = vector.shape_cast %124 : vector<8xf32> to vector<8x1xf32>
    %cst_70 = arith.constant 3.200000e+01 : f32
    %126 = vector.broadcast %cst_70 : f32 to vector<8x1xf32>
    %127 = arith.divf %125, %126 : vector<8x1xf32>
    %128 = vector.broadcast %127 : vector<8x1xf32> to vector<8x32xf32>
    %129 = arith.subf %121, %128 : vector<8x32xf32>
    %130 = arith.mulf %129, %129 : vector<8x32xf32>
    %cst_71 = arith.constant dense<0.000000e+00> : vector<8xf32>
    %131 = vector.multi_reduction <add>, %130, %cst_71 [1] : vector<8x32xf32> to vector<8xf32>
    %132 = vector.shape_cast %131 : vector<8xf32> to vector<8x1xf32>
    %cst_72 = arith.constant 3.200000e+01 : f32
    %133 = vector.broadcast %cst_72 : f32 to vector<8x1xf32>
    %134 = arith.divf %132, %133 : vector<8x1xf32>
    %cst_73 = arith.constant 9.99999996E-13 : f32
    %135 = vector.broadcast %cst_73 : f32 to vector<8x1xf32>
    %136 = arith.addf %134, %135 : vector<8x1xf32>
    %137 = math.rsqrt %136 : vector<8x1xf32>
    %138 = vector.broadcast %127 : vector<8x1xf32> to vector<8x32xf32>
    %139 = arith.subf %121, %138 : vector<8x32xf32>
    %140 = vector.broadcast %137 : vector<8x1xf32> to vector<8x32xf32>
    %141 = arith.mulf %139, %140 : vector<8x32xf32>
    %142 = vector.broadcast %122 : vector<1x32xf32> to vector<8x32xf32>
    %143 = arith.mulf %141, %142 : vector<8x32xf32>
    %144 = vector.broadcast %123 : vector<1x32xf32> to vector<8x32xf32>
    %145 = arith.addf %143, %144 : vector<8x32xf32>
    %c0_74 = arith.constant 0 : index
    %c0_75 = arith.constant 0 : index
    %c0_76 = arith.constant 0 : index
    %146 = vector.load %arg21[%c0_74, %c0_75, %c0_76] : memref<1x8x32xf32, #tpu.memory_space<vmem>>, vector<1x8x32xf32>
    %147 = vector.shape_cast %146 : vector<1x8x32xf32> to vector<8x32xf32>
    %148 = vector.shape_cast %145 : vector<8x32xf32> to vector<1x8x32xf32>
    tpu.vector_store %arg21[%c0_74, %c0_75, %c0_76], %148 {strides = array<i32>} : memref<1x8x32xf32, #tpu.memory_space<vmem>>, vector<1x8x32xf32>,
    return
  }
  func.func @transform_0(%arg0: i32, %arg1: i32) -> (i32, i32, i32) {
    %c0_i32 = arith.constant 0 : i32
    %c0_i32_0 = arith.constant 0 : i32
    return %arg0, %arg1, %c0_i32 : i32, i32, i32
  }
  func.func @transform_1(%arg0: i32, %arg1: i32) -> (i32, i32, i32) {
    %c0_i32 = arith.constant 0 : i32
    %c0_i32_0 = arith.constant 0 : i32
    %c0_i32_1 = arith.constant 0 : i32
    return %arg0, %c0_i32, %c0_i32_0 : i32, i32, i32
  }
  func.func @transform_2(%arg0: i32, %arg1: i32) -> (i32, i32, i32) {
    %c0_i32 = arith.constant 0 : i32
    %c0_i32_0 = arith.constant 0 : i32
    %c0_i32_1 = arith.constant 0 : i32
    return %arg0, %c0_i32, %c0_i32_0 : i32, i32, i32
  }
  func.func @transform_3(%arg0: i32, %arg1: i32) -> (i32, i32, i32) {
    %c0_i32 = arith.constant 0 : i32
    %c0_i32_0 = arith.constant 0 : i32
    %c0_i32_1 = arith.constant 0 : i32
    %c0_i32_2 = arith.constant 0 : i32
    return %c0_i32, %c0_i32_0, %c0_i32_1 : i32, i32, i32
  }
  func.func @transform_4(%arg0: i32, %arg1: i32) -> (i32, i32, i32) {
    %c0_i32 = arith.constant 0 : i32
    %c0_i32_0 = arith.constant 0 : i32
    %c0_i32_1 = arith.constant 0 : i32
    %c0_i32_2 = arith.constant 0 : i32
    return %c0_i32, %c0_i32_0, %c0_i32_1 : i32, i32, i32
  }
  func.func @transform_5(%arg0: i32, %arg1: i32) -> (i32, i32, i32) {
    %c0_i32 = arith.constant 0 : i32
    %c0_i32_0 = arith.constant 0 : i32
    %c0_i32_1 = arith.constant 0 : i32
    %c0_i32_2 = arith.constant 0 : i32
    return %c0_i32, %c0_i32_0, %c0_i32_1 : i32, i32, i32
  }
  func.func @transform_6(%arg0: i32, %arg1: i32) -> (i32, i32, i32) {
    %c0_i32 = arith.constant 0 : i32
    %c0_i32_0 = arith.constant 0 : i32
    %c0_i32_1 = arith.constant 0 : i32
    %c0_i32_2 = arith.constant 0 : i32
    return %c0_i32, %c0_i32_0, %c0_i32_1 : i32, i32, i32
  }
  func.func @transform_7(%arg0: i32, %arg1: i32) -> (i32, i32, i32) {
    %c0_i32 = arith.constant 0 : i32
    %c0_i32_0 = arith.constant 0 : i32
    %c0_i32_1 = arith.constant 0 : i32
    %c0_i32_2 = arith.constant 0 : i32
    return %c0_i32, %c0_i32_0, %c0_i32_1 : i32, i32, i32
  }
  func.func @transform_8(%arg0: i32, %arg1: i32) -> (i32, i32, i32) {
    %c0_i32 = arith.constant 0 : i32
    %c0_i32_0 = arith.constant 0 : i32
    %c0_i32_1 = arith.constant 0 : i32
    %c0_i32_2 = arith.constant 0 : i32
    return %c0_i32, %c0_i32_0, %c0_i32_1 : i32, i32, i32
  }
  func.func @transform_9(%arg0: i32, %arg1: i32) -> (i32, i32, i32) {
    %c0_i32 = arith.constant 0 : i32
    %c0_i32_0 = arith.constant 0 : i32
    %c0_i32_1 = arith.constant 0 : i32
    %c0_i32_2 = arith.constant 0 : i32
    return %c0_i32, %c0_i32_0, %c0_i32_1 : i32, i32, i32
  }
  func.func @transform_10(%arg0: i32, %arg1: i32) -> (i32, i32) {
    %c0_i32 = arith.constant 0 : i32
    %c0_i32_0 = arith.constant 0 : i32
    %c0_i32_1 = arith.constant 0 : i32
    return %c0_i32, %c0_i32_0 : i32, i32
  }
  func.func @transform_11(%arg0: i32, %arg1: i32) -> (i32, i32) {
    %c0_i32 = arith.constant 0 : i32
    %c0_i32_0 = arith.constant 0 : i32
    %c0_i32_1 = arith.constant 0 : i32
    return %c0_i32, %c0_i32_0 : i32, i32
  }
  func.func @transform_12(%arg0: i32, %arg1: i32) -> (i32, i32) {
    %c0_i32 = arith.constant 0 : i32
    %c0_i32_0 = arith.constant 0 : i32
    %c0_i32_1 = arith.constant 0 : i32
    return %c0_i32, %c0_i32_0 : i32, i32
  }
  func.func @transform_13(%arg0: i32, %arg1: i32) -> (i32, i32) {
    %c0_i32 = arith.constant 0 : i32
    %c0_i32_0 = arith.constant 0 : i32
    %c0_i32_1 = arith.constant 0 : i32
    return %c0_i32, %c0_i32_0 : i32, i32
  }
  func.func @transform_14(%arg0: i32, %arg1: i32) -> (i32, i32) {
    %c0_i32 = arith.constant 0 : i32
    %c0_i32_0 = arith.constant 0 : i32
    %c0_i32_1 = arith.constant 0 : i32
    return %c0_i32, %c0_i32_0 : i32, i32
  }
  func.func @transform_15(%arg0: i32, %arg1: i32) -> (i32, i32) {
    %c0_i32 = arith.constant 0 : i32
    %c0_i32_0 = arith.constant 0 : i32
    %c0_i32_1 = arith.constant 0 : i32
    return %c0_i32, %c0_i32_0 : i32, i32
  }
  func.func @transform_16(%arg0: i32, %arg1: i32) -> (i32, i32) {
    %c0_i32 = arith.constant 0 : i32
    %c0_i32_0 = arith.constant 0 : i32
    %c0_i32_1 = arith.constant 0 : i32
    return %c0_i32, %c0_i32_0 : i32, i32
  }
  func.func @transform_17(%arg0: i32, %arg1: i32) -> (i32, i32) {
    %c0_i32 = arith.constant 0 : i32
    %c0_i32_0 = arith.constant 0 : i32
    %c0_i32_1 = arith.constant 0 : i32
    return %c0_i32, %c0_i32_0 : i32, i32
  }
  func.func @transform_18(%arg0: i32, %arg1: i32) -> (i32, i32) {
    %c0_i32 = arith.constant 0 : i32
    %c0_i32_0 = arith.constant 0 : i32
    %c0_i32_1 = arith.constant 0 : i32
    return %c0_i32, %c0_i32_0 : i32, i32
  }
  func.func @transform_19(%arg0: i32, %arg1: i32) -> (i32, i32, i32) {
    %c0_i32 = arith.constant 0 : i32
    %c0_i32_0 = arith.constant 0 : i32
    return %arg0, %arg1, %c0_i32 : i32, i32, i32
  }
}

module attributes {stable_mosaic.version = 11 : i64} {
  func.func @encoder_layer_kernel(%arg0: i32, %arg1: i32, %arg2: memref<1x8x32xf32, #tpu.memory_space<vmem>>, %arg3: memref<1x8x32xf32, #tpu.memory_space<vmem>>, %arg4: memref<1x1x8xf32, #tpu.memory_space<vmem>>, %arg5: memref<4x32x8xbf16, #tpu.memory_space<vmem>>, %arg6: memref<4x1x8xf32, #tpu.memory_space<vmem>>, %arg7: memref<4x32x8xbf16, #tpu.memory_space<vmem>>, %arg8: memref<4x1x8xf32, #tpu.memory_space<vmem>>, %arg9: memref<4x32x8xbf16, #tpu.memory_space<vmem>>, %arg10: memref<4x1x8xf32, #tpu.memory_space<vmem>>, %arg11: memref<4x8x32xbf16, #tpu.memory_space<vmem>>, %arg12: memref<1x32xf32, #tpu.memory_space<vmem>>, %arg13: memref<1x32xf32, #tpu.memory_space<vmem>>, %arg14: memref<1x32xf32, #tpu.memory_space<vmem>>, %arg15: memref<32x64xbf16, #tpu.memory_space<vmem>>, %arg16: memref<1x64xf32, #tpu.memory_space<vmem>>, %arg17: memref<64x32xbf16, #tpu.memory_space<vmem>>, %arg18: memref<1x32xf32, #tpu.memory_space<vmem>>, %arg19: memref<1x32xf32, #tpu.memory_space<vmem>>, %arg20: memref<1x32xf32, #tpu.memory_space<vmem>>, %arg21: memref<1x8x32xf32, #tpu.memory_space<vmem>>) attributes {dimension_semantics = [#tpu.dimension_semantics<parallel>, #tpu.dimension_semantics<parallel>], iteration_bounds = array<i64: 2, 1>, scalar_prefetch = 0 : i64, scratch_operands = 0 : i64, tpu.core_type = #tpu.core_type<tc>, window_params = [{transform_indices = @transform_0, window_bounds = array<i64: 1, 8, 32>}, {transform_indices = @transform_1, window_bounds = array<i64: 1, 8, 32>}, {transform_indices = @transform_2, window_bounds = array<i64: 1, 1, 8>}, {pipeline_mode = #tpu.pipeline_mode<synchronous>, transform_indices = @transform_3, window_bounds = array<i64: 4, 32, 8>}, {pipeline_mode = #tpu.pipeline_mode<synchronous>, transform_indices = @transform_4, window_bounds = array<i64: 4, 1, 8>}, {pipeline_mode = #tpu.pipeline_mode<synchronous>, transform_indices = @transform_5, window_bounds = array<i64: 4, 32, 8>}, {pipeline_mode = #tpu.pipeline_mode<synchronous>, transform_indices = @transform_6, window_bounds = array<i64: 4, 1, 8>}, {pipeline_mode = #tpu.pipeline_mode<synchronous>, transform_indices = @transform_7, window_bounds = array<i64: 4, 32, 8>}, {pipeline_mode = #tpu.pipeline_mode<synchronous>, transform_indices = @transform_8, window_bounds = array<i64: 4, 1, 8>}, {pipeline_mode = #tpu.pipeline_mode<synchronous>, transform_indices = @transform_9, window_bounds = array<i64: 4, 8, 32>}, {pipeline_mode = #tpu.pipeline_mode<synchronous>, transform_indices = @transform_10, window_bounds = array<i64: 1, 32>}, {pipeline_mode = #tpu.pipeline_mode<synchronous>, transform_indices = @transform_11, window_bounds = array<i64: 1, 32>}, {pipeline_mode = #tpu.pipeline_mode<synchronous>, transform_indices = @transform_12, window_bounds = array<i64: 1, 32>}, {pipeline_mode = #tpu.pipeline_mode<synchronous>, transform_indices = @transform_13, window_bounds = array<i64: 32, 64>}, {pipeline_mode = #tpu.pipeline_mode<synchronous>, transform_indices = @transform_14, window_bounds = array<i64: 1, 64>}, {pipeline_mode = #tpu.pipeline_mode<synchronous>, transform_indices = @transform_15, window_bounds = array<i64: 64, 32>}, {pipeline_mode = #tpu.pipeline_mode<synchronous>, transform_indices = @transform_16, window_bounds = array<i64: 1, 32>}, {pipeline_mode = #tpu.pipeline_mode<synchronous>, transform_indices = @transform_17, window_bounds = array<i64: 1, 32>}, {pipeline_mode = #tpu.pipeline_mode<synchronous>, transform_indices = @transform_18, window_bounds = array<i64: 1, 32>}, {transform_indices = @transform_19, window_bounds = array<i64: 1, 8, 32>}]} {
    %c0 = arith.constant 0 : index
    %c0_0 = arith.constant 0 : index
    %c0_1 = arith.constant 0 : index
    %0 = vector.load %arg2[%c0, %c0_0, %c0_1] : memref<1x8x32xf32, #tpu.memory_space<vmem>>, vector<1x8x32xf32>
    %1 = vector.shape_cast %0 : vector<1x8x32xf32> to vector<8x32xf32>
    %c0_2 = arith.constant 0 : index
    %c0_3 = arith.constant 0 : index
    %c0_4 = arith.constant 0 : index
    %2 = vector.load %arg3[%c0_2, %c0_3, %c0_4] : memref<1x8x32xf32, #tpu.memory_space<vmem>>, vector<1x8x32xf32>
    %3 = vector.shape_cast %2 : vector<1x8x32xf32> to vector<8x32xf32>
    %c0_5 = arith.constant 0 : index
    %c0_6 = arith.constant 0 : index
    %c0_7 = arith.constant 0 : index
    %4 = vector.load %arg4[%c0_5, %c0_6, %c0_7] : memref<1x1x8xf32, #tpu.memory_space<vmem>>, vector<1x1x8xf32>
    %5 = vector.shape_cast %4 : vector<1x1x8xf32> to vector<1x8xf32>
    %cst = arith.constant 1.000000e+00 : f32
    %6 = vector.broadcast %cst : f32 to vector<1x8xf32>
    %7 = arith.subf %6, %5 : vector<1x8xf32>
    %cst_8 = arith.constant -1.000000e+04 : f32
    %8 = vector.broadcast %cst_8 : f32 to vector<1x8xf32>
    %9 = arith.mulf %7, %8 : vector<1x8xf32>
    %10 = arith.truncf %1 : vector<8x32xf32> to vector<8x32xbf16>
    %11 = arith.truncf %3 : vector<8x32xf32> to vector<8x32xbf16>
    %12 = vector.shape_cast %10 : vector<8x32xbf16> to vector<1x8x32xbf16>
    %13 = vector.broadcast %12 : vector<1x8x32xbf16> to vector<4x8x32xbf16>
    %14 = vector.shape_cast %11 : vector<8x32xbf16> to vector<1x8x32xbf16>
    %15 = vector.broadcast %14 : vector<1x8x32xbf16> to vector<4x8x32xbf16>
    %c0_9 = arith.constant 0 : index
    %c0_10 = arith.constant 0 : index
    %c0_11 = arith.constant 0 : index
    %16 = vector.load %arg5[%c0_9, %c0_10, %c0_11] : memref<4x32x8xbf16, #tpu.memory_space<vmem>>, vector<4x32x8xbf16>
    "tpu.trace_start"() <{level = 10 : i32, message = "hqe,hed->hqd"}> : () -> ()
    %cst_12 = arith.constant dense<0.000000e+00> : vector<4x8x8xf32>
    %17 = tpu.matmul %13, %16, %cst_12 {dimension_numbers = #tpu.dot_dimension_numbers<[2], [1], [1], [2], [0, 0, 0, 1, 1, 2], [0], [0]>} : vector<4x8x32xbf16>, vector<4x32x8xbf16>, vector<4x8x8xf32> -> vector<4x8x8xf32>
    "tpu.trace_stop"() : () -> ()
    %c0_13 = arith.constant 0 : index
    %c0_14 = arith.constant 0 : index
    %c0_15 = arith.constant 0 : index
    %18 = vector.load %arg6[%c0_13, %c0_14, %c0_15] : memref<4x1x8xf32, #tpu.memory_space<vmem>>, vector<4x1x8xf32>
    %19 = vector.broadcast %18 : vector<4x1x8xf32> to vector<4x8x8xf32>
    %20 = arith.addf %17, %19 : vector<4x8x8xf32>
    %c0_16 = arith.constant 0 : index
    %c0_17 = arith.constant 0 : index
    %c0_18 = arith.constant 0 : index
    %21 = vector.load %arg7[%c0_16, %c0_17, %c0_18] : memref<4x32x8xbf16, #tpu.memory_space<vmem>>, vector<4x32x8xbf16>
    "tpu.trace_start"() <{level = 10 : i32, message = "hse,hed->hsd"}> : () -> ()
    %cst_19 = arith.constant dense<0.000000e+00> : vector<4x8x8xf32>
    %22 = tpu.matmul %15, %21, %cst_19 {dimension_numbers = #tpu.dot_dimension_numbers<[2], [1], [1], [2], [0, 0, 0, 1, 1, 2], [0], [0]>} : vector<4x8x32xbf16>, vector<4x32x8xbf16>, vector<4x8x8xf32> -> vector<4x8x8xf32>
    "tpu.trace_stop"() : () -> ()
    %c0_20 = arith.constant 0 : index
    %c0_21 = arith.constant 0 : index
    %c0_22 = arith.constant 0 : index
    %23 = vector.load %arg8[%c0_20, %c0_21, %c0_22] : memref<4x1x8xf32, #tpu.memory_space<vmem>>, vector<4x1x8xf32>
    %24 = vector.broadcast %23 : vector<4x1x8xf32> to vector<4x8x8xf32>
    %25 = arith.addf %22, %24 : vector<4x8x8xf32>
    %c0_23 = arith.constant 0 : index
    %c0_24 = arith.constant 0 : index
    %c0_25 = arith.constant 0 : index
    %26 = vector.load %arg9[%c0_23, %c0_24, %c0_25] : memref<4x32x8xbf16, #tpu.memory_space<vmem>>, vector<4x32x8xbf16>
    "tpu.trace_start"() <{level = 10 : i32, message = "hse,hed->hsd"}> : () -> ()
    %cst_26 = arith.constant dense<0.000000e+00> : vector<4x8x8xf32>
    %27 = tpu.matmul %15, %26, %cst_26 {dimension_numbers = #tpu.dot_dimension_numbers<[2], [1], [1], [2], [0, 0, 0, 1, 1, 2], [0], [0]>} : vector<4x8x32xbf16>, vector<4x32x8xbf16>, vector<4x8x8xf32> -> vector<4x8x8xf32>
    "tpu.trace_stop"() : () -> ()
    %c0_27 = arith.constant 0 : index
    %c0_28 = arith.constant 0 : index
    %c0_29 = arith.constant 0 : index
    %28 = vector.load %arg10[%c0_27, %c0_28, %c0_29] : memref<4x1x8xf32, #tpu.memory_space<vmem>>, vector<4x1x8xf32>
    %29 = vector.broadcast %28 : vector<4x1x8xf32> to vector<4x8x8xf32>
    %30 = arith.addf %27, %29 : vector<4x8x8xf32>
    %31 = arith.truncf %20 : vector<4x8x8xf32> to vector<4x8x8xbf16>
    %32 = arith.truncf %25 : vector<4x8x8xf32> to vector<4x8x8xbf16>
    "tpu.trace_start"() <{level = 10 : i32, message = "hqd,hkd->hqk"}> : () -> ()
    %cst_30 = arith.constant dense<0.000000e+00> : vector<4x8x8xf32>
    %33 = tpu.matmul %31, %32, %cst_30 {dimension_numbers = #tpu.dot_dimension_numbers<[2], [2], [1], [1], [0, 0, 0, 1, 1, 1], [0], [0]>} : vector<4x8x8xbf16>, vector<4x8x8xbf16>, vector<4x8x8xf32> -> vector<4x8x8xf32>
    "tpu.trace_stop"() : () -> ()
    %cst_31 = arith.constant 0.353553385 : f32
    %34 = vector.broadcast %cst_31 : f32 to vector<4x8x8xf32>
    %35 = arith.mulf %33, %34 : vector<4x8x8xf32>
    %36 = vector.shape_cast %9 : vector<1x8xf32> to vector<1x1x8xf32>
    %37 = vector.broadcast %36 : vector<1x1x8xf32> to vector<4x8x8xf32>
    %38 = arith.addf %35, %37 : vector<4x8x8xf32>
    %cst_32 = arith.constant dense<0xFF800000> : vector<4x8xf32>
    %39 = vector.multi_reduction <maximumf>, %38, %cst_32 [2] : vector<4x8x8xf32> to vector<4x8xf32>
    %40 = vector.shape_cast %39 : vector<4x8xf32> to vector<4x8x1xf32>
    %41 = vector.broadcast %40 : vector<4x8x1xf32> to vector<4x8x8xf32>
    %42 = arith.subf %38, %41 : vector<4x8x8xf32>
    %43 = math.exp %42 : vector<4x8x8xf32>
    %cst_33 = arith.constant dense<0.000000e+00> : vector<4x8xf32>
    %44 = vector.multi_reduction <add>, %43, %cst_33 [2] : vector<4x8x8xf32> to vector<4x8xf32>
    %45 = vector.shape_cast %44 : vector<4x8xf32> to vector<4x8x1xf32>
    %46 = tpu.reciprocal %45 {approx = true} : vector<4x8x1xf32> -> vector<4x8x1xf32>
    %47 = vector.broadcast %46 : vector<4x8x1xf32> to vector<4x8x8xf32>
    %48 = arith.mulf %43, %47 : vector<4x8x8xf32>
    %49 = arith.truncf %48 : vector<4x8x8xf32> to vector<4x8x8xbf16>
    %50 = arith.truncf %30 : vector<4x8x8xf32> to vector<4x8x8xbf16>
    "tpu.trace_start"() <{level = 10 : i32, message = "hqk,hkd->hqd"}> : () -> ()
    %cst_34 = arith.constant dense<0.000000e+00> : vector<4x8x8xf32>
    %51 = tpu.matmul %49, %50, %cst_34 {dimension_numbers = #tpu.dot_dimension_numbers<[2], [1], [1], [2], [0, 0, 0, 1, 1, 2], [0], [0]>} : vector<4x8x8xbf16>, vector<4x8x8xbf16>, vector<4x8x8xf32> -> vector<4x8x8xf32>
    "tpu.trace_stop"() : () -> ()
    %52 = arith.truncf %51 : vector<4x8x8xf32> to vector<4x8x8xbf16>
    %c0_35 = arith.constant 0 : index
    %c0_36 = arith.constant 0 : index
    %c0_37 = arith.constant 0 : index
    %53 = vector.load %arg11[%c0_35, %c0_36, %c0_37] : memref<4x8x32xbf16, #tpu.memory_space<vmem>>, vector<4x8x32xbf16>
    "tpu.trace_start"() <{level = 10 : i32, message = "hqd,hde->hqe"}> : () -> ()
    %cst_38 = arith.constant dense<0.000000e+00> : vector<4x8x32xf32>
    %54 = tpu.matmul %52, %53, %cst_38 {dimension_numbers = #tpu.dot_dimension_numbers<[2], [1], [1], [2], [0, 0, 0, 1, 1, 2], [0], [0]>} : vector<4x8x8xbf16>, vector<4x8x32xbf16>, vector<4x8x32xf32> -> vector<4x8x32xf32>
    "tpu.trace_stop"() : () -> ()
    %55 = vector.extract_strided_slice %54 {offsets = [0, 0, 0], sizes = [1, 8, 32], strides = [1, 1, 1]} : vector<4x8x32xf32> to vector<1x8x32xf32>
    %56 = vector.shape_cast %55 : vector<1x8x32xf32> to vector<8x32xf32>
    %57 = vector.extract_strided_slice %54 {offsets = [1, 0, 0], sizes = [1, 8, 32], strides = [1, 1, 1]} : vector<4x8x32xf32> to vector<1x8x32xf32>
    %58 = vector.shape_cast %57 : vector<1x8x32xf32> to vector<8x32xf32>
    %59 = arith.addf %56, %58 : vector<8x32xf32>
    %60 = vector.extract_strided_slice %54 {offsets = [2, 0, 0], sizes = [1, 8, 32], strides = [1, 1, 1]} : vector<4x8x32xf32> to vector<1x8x32xf32>
    %61 = vector.shape_cast %60 : vector<1x8x32xf32> to vector<8x32xf32>
    %62 = arith.addf %59, %61 : vector<8x32xf32>
    %63 = vector.extract_strided_slice %54 {offsets = [3, 0, 0], sizes = [1, 8, 32], strides = [1, 1, 1]} : vector<4x8x32xf32> to vector<1x8x32xf32>
    %64 = vector.shape_cast %63 : vector<1x8x32xf32> to vector<8x32xf32>
    %65 = arith.addf %62, %64 : vector<8x32xf32>
    %c0_39 = arith.constant 0 : index
    %c0_40 = arith.constant 0 : index
    %66 = vector.load %arg12[%c0_39, %c0_40] : memref<1x32xf32, #tpu.memory_space<vmem>>, vector<1x32xf32>
    %67 = vector.broadcast %66 : vector<1x32xf32> to vector<8x32xf32>
    %68 = arith.addf %65, %67 : vector<8x32xf32>
    %69 = arith.addf %68, %1 : vector<8x32xf32>
    %c0_41 = arith.constant 0 : index
    %c0_42 = arith.constant 0 : index
    %70 = vector.load %arg13[%c0_41, %c0_42] : memref<1x32xf32, #tpu.memory_space<vmem>>, vector<1x32xf32>
    %c0_43 = arith.constant 0 : index
    %c0_44 = arith.constant 0 : index
    %71 = vector.load %arg14[%c0_43, %c0_44] : memref<1x32xf32, #tpu.memory_space<vmem>>, vector<1x32xf32>
    %cst_45 = arith.constant dense<0.000000e+00> : vector<8xf32>
    %72 = vector.multi_reduction <add>, %69, %cst_45 [1] : vector<8x32xf32> to vector<8xf32>
    %73 = vector.shape_cast %72 : vector<8xf32> to vector<8x1xf32>
    %cst_46 = arith.constant 3.200000e+01 : f32
    %74 = vector.broadcast %cst_46 : f32 to vector<8x1xf32>
    %75 = arith.divf %73, %74 : vector<8x1xf32>
    %76 = vector.broadcast %75 : vector<8x1xf32> to vector<8x32xf32>
    %77 = arith.subf %69, %76 : vector<8x32xf32>
    %78 = arith.mulf %77, %77 : vector<8x32xf32>
    %cst_47 = arith.constant dense<0.000000e+00> : vector<8xf32>
    %79 = vector.multi_reduction <add>, %78, %cst_47 [1] : vector<8x32xf32> to vector<8xf32>
    %80 = vector.shape_cast %79 : vector<8xf32> to vector<8x1xf32>
    %cst_48 = arith.constant 3.200000e+01 : f32
    %81 = vector.broadcast %cst_48 : f32 to vector<8x1xf32>
    %82 = arith.divf %80, %81 : vector<8x1xf32>
    %cst_49 = arith.constant 9.99999996E-13 : f32
    %83 = vector.broadcast %cst_49 : f32 to vector<8x1xf32>
    %84 = arith.addf %82, %83 : vector<8x1xf32>
    %85 = math.rsqrt %84 : vector<8x1xf32>
    %86 = vector.broadcast %75 : vector<8x1xf32> to vector<8x32xf32>
    %87 = arith.subf %69, %86 : vector<8x32xf32>
    %88 = vector.broadcast %85 : vector<8x1xf32> to vector<8x32xf32>
    %89 = arith.mulf %87, %88 : vector<8x32xf32>
    %90 = vector.broadcast %70 : vector<1x32xf32> to vector<8x32xf32>
    %91 = arith.mulf %89, %90 : vector<8x32xf32>
    %92 = vector.broadcast %71 : vector<1x32xf32> to vector<8x32xf32>
    %93 = arith.addf %91, %92 : vector<8x32xf32>
    %94 = arith.truncf %93 : vector<8x32xf32> to vector<8x32xbf16>
    %cst_50 = arith.constant 0.000000e+00 : f32
    %95 = vector.broadcast %cst_50 : f32 to vector<8x32xf32>
    %c0_51 = arith.constant 0 : index
    %c0_52 = arith.constant 0 : index
    %96 = vector.load %arg15[%c0_51, %c0_52] : memref<32x64xbf16, #tpu.memory_space<vmem>>, vector<32x64xbf16>
    %cst_53 = arith.constant dense<0.000000e+00> : vector<8x64xf32>
    %97 = tpu.matmul %94, %96, %cst_53 {dimension_numbers = #tpu.dot_dimension_numbers<[1], [0], [0], [1], [0, 0, 1, 1], [], []>} : vector<8x32xbf16>, vector<32x64xbf16>, vector<8x64xf32> -> vector<8x64xf32>
    %c0_54 = arith.constant 0 : index
    %c0_55 = arith.constant 0 : index
    %98 = vector.load %arg16[%c0_54, %c0_55] : memref<1x64xf32, #tpu.memory_space<vmem>>, vector<1x64xf32>
    %99 = vector.broadcast %98 : vector<1x64xf32> to vector<8x64xf32>
    %100 = arith.addf %97, %99 : vector<8x64xf32>
    %cst_56 = arith.constant 5.000000e-01 : f32
    %101 = vector.broadcast %cst_56 : f32 to vector<8x64xf32>
    %102 = arith.mulf %101, %100 : vector<8x64xf32>
    %103 = arith.mulf %100, %100 : vector<8x64xf32>
    %104 = arith.mulf %103, %100 : vector<8x64xf32>
    %cst_57 = arith.constant 4.471500e-02 : f32
    %105 = vector.broadcast %cst_57 : f32 to vector<8x64xf32>
    %106 = arith.mulf %105, %104 : vector<8x64xf32>
    %107 = arith.addf %100, %106 : vector<8x64xf32>
    %cst_58 = arith.constant 0.797884583 : f32
    %108 = vector.broadcast %cst_58 : f32 to vector<8x64xf32>
    %109 = arith.mulf %108, %107 : vector<8x64xf32>
    %110 = math.tanh %109 : vector<8x64xf32>
    %cst_59 = arith.constant 1.000000e+00 : f32
    %111 = vector.broadcast %cst_59 : f32 to vector<8x64xf32>
    %112 = arith.addf %111, %110 : vector<8x64xf32>
    %113 = arith.mulf %102, %112 : vector<8x64xf32>
    %114 = arith.truncf %113 : vector<8x64xf32> to vector<8x64xbf16>
    %c0_60 = arith.constant 0 : index
    %c0_61 = arith.constant 0 : index
    %115 = vector.load %arg17[%c0_60, %c0_61] : memref<64x32xbf16, #tpu.memory_space<vmem>>, vector<64x32xbf16>
    %cst_62 = arith.constant dense<0.000000e+00> : vector<8x32xf32>
    %116 = tpu.matmul %114, %115, %cst_62 {dimension_numbers = #tpu.dot_dimension_numbers<[1], [0], [0], [1], [0, 0, 1, 1], [], []>} : vector<8x64xbf16>, vector<64x32xbf16>, vector<8x32xf32> -> vector<8x32xf32>
    %117 = arith.addf %95, %116 : vector<8x32xf32>
    %c0_63 = arith.constant 0 : index
    %c0_64 = arith.constant 0 : index
    %118 = vector.load %arg18[%c0_63, %c0_64] : memref<1x32xf32, #tpu.memory_space<vmem>>, vector<1x32xf32>
    %119 = vector.broadcast %118 : vector<1x32xf32> to vector<8x32xf32>
    %120 = arith.addf %117, %119 : vector<8x32xf32>
    %121 = arith.addf %120, %93 : vector<8x32xf32>
    %c0_65 = arith.constant 0 : index
    %c0_66 = arith.constant 0 : index
    %122 = vector.load %arg19[%c0_65, %c0_66] : memref<1x32xf32, #tpu.memory_space<vmem>>, vector<1x32xf32>
    %c0_67 = arith.constant 0 : index
    %c0_68 = arith.constant 0 : index
    %123 = vector.load %arg20[%c0_67, %c0_68] : memref<1x32xf32, #tpu.memory_space<vmem>>, vector<1x32xf32>
    %cst_69 = arith.constant dense<0.000000e+00> : vector<8xf32>
    %124 = vector.multi_reduction <add>, %121, %cst_69 [1] : vector<8x32xf32> to vector<8xf32>
    %125 = vector.shape_cast %124 : vector<8xf32> to vector<8x1xf32>
    %cst_70 = arith.constant 3.200000e+01 : f32
    %126 = vector.broadcast %cst_70 : f32 to vector<8x1xf32>
    %127 = arith.divf %125, %126 : vector<8x1xf32>
    %128 = vector.broadcast %127 : vector<8x1xf32> to vector<8x32xf32>
    %129 = arith.subf %121, %128 : vector<8x32xf32>
    %130 = arith.mulf %129, %129 : vector<8x32xf32>
    %cst_71 = arith.constant dense<0.000000e+00> : vector<8xf32>
    %131 = vector.multi_reduction <add>, %130, %cst_71 [1] : vector<8x32xf32> to vector<8xf32>
    %132 = vector.shape_cast %131 : vector<8xf32> to vector<8x1xf32>
    %cst_72 = arith.constant 3.200000e+01 : f32
    %133 = vector.broadcast %cst_72 : f32 to vector<8x1xf32>
    %134 = arith.divf %132, %133 : vector<8x1xf32>
    %cst_73 = arith.constant 9.99999996E-13 : f32
    %135 = vector.broadcast %cst_73 : f32 to vector<8x1xf32>
    %136 = arith.addf %134, %135 : vector<8x1xf32>
    %137 = math.rsqrt %136 : vector<8x1xf32>
    %138 = vector.broadcast %127 : vector<8x1xf32> to vector<8x32xf32>
    %139 = arith.subf %121, %138 : vector<8x32xf32>
    %140 = vector.broadcast %137 : vector<8x1xf32> to vector<8x32xf32>
    %141 = arith.mulf %139, %140 : vector<8x32xf32>
    %142 = vector.broadcast %122 : vector<1x32xf32> to vector<8x32xf32>
    %143 = arith.mulf %141, %142 : vector<8x32xf32>
    %144 = vector.broadcast %123 : vector<1x32xf32> to vector<8x32xf32>
    %145 = arith.addf %143, %144 : vector<8x32xf32>
    %c0_74 = arith.constant 0 : index
    %c0_75 = arith.constant 0 : index
    %c0_76 = arith.constant 0 : index
    %146 = vector.load %arg21[%c0_74, %c0_75, %c0_76] : memref<1x8x32xf32, #tpu.memory_space<vmem>>, vector<1x8x32xf32>
    %147 = vector.shape_cast %146 : vector<1x8x32xf32> to vector<8x32xf32>
    %148 = vector.shape_cast %145 : vector<8x32xf32> to vector<1x8x32xf32>
    tpu.vector_store %arg21[%c0_74, %c0_75, %c0_76], %148 {strides = array<i32>} : memref<1x8x32xf32, #tpu.memory_space<vmem>>, vector<1x8x32xf32>,
    return
  }
  func.func @transform_0(%arg0: i32, %arg1: i32) -> (i32, i32, i32) {
    %c0_i32 = arith.constant 0 : i32
    %c0_i32_0 = arith.constant 0 : i32
    return %arg0, %arg1, %c0_i32 : i32, i32, i32
  }
  func.func @transform_1(%arg0: i32, %arg1: i32) -> (i32, i32, i32) {
    %c0_i32 = arith.constant 0 : i32
    %c0_i32_0 = arith.constant 0 : i32
    %c0_i32_1 = arith.constant 0 : i32
    return %arg0, %c0_i32, %c0_i32_0 : i32, i32, i32
  }
  func.func @transform_2(%arg0: i32, %arg1: i32) -> (i32, i32, i32) {
    %c0_i32 = arith.constant 0 : i32
    %c0_i32_0 = arith.constant 0 : i32
    %c0_i32_1 = arith.constant 0 : i32
    return %arg0, %c0_i32, %c0_i32_0 : i32, i32, i32
  }
  func.func @transform_3(%arg0: i32, %arg1: i32) -> (i32, i32, i32) {
    %c0_i32 = arith.constant 0 : i32
    %c0_i32_0 = arith.constant 0 : i32
    %c0_i32_1 = arith.constant 0 : i32
    %c0_i32_2 = arith.constant 0 : i32
    return %c0_i32, %c0_i32_0, %c0_i32_1 : i32, i32, i32
  }
  func.func @transform_4(%arg0: i32, %arg1: i32) -> (i32, i32, i32) {
    %c0_i32 = arith.constant 0 : i32
    %c0_i32_0 = arith.constant 0 : i32
    %c0_i32_1 = arith.constant 0 : i32
    %c0_i32_2 = arith.constant 0 : i32
    return %c0_i32, %c0_i32_0, %c0_i32_1 : i32, i32, i32
  }
  func.func @transform_5(%arg0: i32, %arg1: i32) -> (i32, i32, i32) {
    %c0_i32 = arith.constant 0 : i32
    %c0_i32_0 = arith.constant 0 : i32
    %c0_i32_1 = arith.constant 0 : i32
    %c0_i32_2 = arith.constant 0 : i32
    return %c0_i32, %c0_i32_0, %c0_i32_1 : i32, i32, i32
  }
  func.func @transform_6(%arg0: i32, %arg1: i32) -> (i32, i32, i32) {
    %c0_i32 = arith.constant 0 : i32
    %c0_i32_0 = arith.constant 0 : i32
    %c0_i32_1 = arith.constant 0 : i32
    %c0_i32_2 = arith.constant 0 : i32
    return %c0_i32, %c0_i32_0, %c0_i32_1 : i32, i32, i32
  }
  func.func @transform_7(%arg0: i32, %arg1: i32) -> (i32, i32, i32) {
    %c0_i32 = arith.constant 0 : i32
    %c0_i32_0 = arith.constant 0 : i32
    %c0_i32_1 = arith.constant 0 : i32
    %c0_i32_2 = arith.constant 0 : i32
    return %c0_i32, %c0_i32_0, %c0_i32_1 : i32, i32, i32
  }
  func.func @transform_8(%arg0: i32, %arg1: i32) -> (i32, i32, i32) {
    %c0_i32 = arith.constant 0 : i32
    %c0_i32_0 = arith.constant 0 : i32
    %c0_i32_1 = arith.constant 0 : i32
    %c0_i32_2 = arith.constant 0 : i32
    return %c0_i32, %c0_i32_0, %c0_i32_1 : i32, i32, i32
  }
  func.func @transform_9(%arg0: i32, %arg1: i32) -> (i32, i32, i32) {
    %c0_i32 = arith.constant 0 : i32
    %c0_i32_0 = arith.constant 0 : i32
    %c0_i32_1 = arith.constant 0 : i32
    %c0_i32_2 = arith.constant 0 : i32
    return %c0_i32, %c0_i32_0, %c0_i32_1 : i32, i32, i32
  }
  func.func @transform_10(%arg0: i32, %arg1: i32) -> (i32, i32) {
    %c0_i32 = arith.constant 0 : i32
    %c0_i32_0 = arith.constant 0 : i32
    %c0_i32_1 = arith.constant 0 : i32
    return %c0_i32, %c0_i32_0 : i32, i32
  }
  func.func @transform_11(%arg0: i32, %arg1: i32) -> (i32, i32) {
    %c0_i32 = arith.constant 0 : i32
    %c0_i32_0 = arith.constant 0 : i32
    %c0_i32_1 = arith.constant 0 : i32
    return %c0_i32, %c0_i32_0 : i32, i32
  }
  func.func @transform_12(%arg0: i32, %arg1: i32) -> (i32, i32) {
    %c0_i32 = arith.constant 0 : i32
    %c0_i32_0 = arith.constant 0 : i32
    %c0_i32_1 = arith.constant 0 : i32
    return %c0_i32, %c0_i32_0 : i32, i32
  }
  func.func @transform_13(%arg0: i32, %arg1: i32) -> (i32, i32) {
    %c0_i32 = arith.constant 0 : i32
    %c0_i32_0 = arith.constant 0 : i32
    %c0_i32_1 = arith.constant 0 : i32
    return %c0_i32, %c0_i32_0 : i32, i32
  }
  func.func @transform_14(%arg0: i32, %arg1: i32) -> (i32, i32) {
    %c0_i32 = arith.constant 0 : i32
    %c0_i32_0 = arith.constant 0 : i32
    %c0_i32_1 = arith.constant 0 : i32
    return %c0_i32, %c0_i32_0 : i32, i32
  }
  func.func @transform_15(%arg0: i32, %arg1: i32) -> (i32, i32) {
    %c0_i32 = arith.constant 0 : i32
    %c0_i32_0 = arith.constant 0 : i32
    %c0_i32_1 = arith.constant 0 : i32
    return %c0_i32, %c0_i32_0 : i32, i32
  }
  func.func @transform_16(%arg0: i32, %arg1: i32) -> (i32, i32) {
    %c0_i32 = arith.constant 0 : i32
    %c0_i32_0 = arith.constant 0 : i32
    %c0_i32_1 = arith.constant 0 : i32
    return %c0_i32, %c0_i32_0 : i32, i32
  }
  func.func @transform_17(%arg0: i32, %arg1: i32) -> (i32, i32) {
    %c0_i32 = arith.constant 0 : i32
    %c0_i32_0 = arith.constant 0 : i32
    %c0_i32_1 = arith.constant 0 : i32
    return %c0_i32, %c0_i32_0 : i32, i32
  }
  func.func @transform_18(%arg0: i32, %arg1: i32) -> (i32, i32) {
    %c0_i32 = arith.constant 0 : i32
    %c0_i32_0 = arith.constant 0 : i32
    %c0_i32_1 = arith.constant 0 : i32
    return %c0_i32, %c0_i32_0 : i32, i32
  }
  func.func @transform_19(%arg0: i32, %arg1: i32) -> (i32, i32, i32) {
    %c0_i32 = arith.constant 0 : i32
    %c0_i32_0 = arith.constant 0 : i32
    return %arg0, %arg1, %c0_i32 : i32, i32, i32
  }
}

</mosaic_0001>

<bundles_post_ra>
// kernel: tpu_custom_call.1
= control target key start
LH: loop header
LB: loop body
LE: loop exit
PB: predicated region body
PF: predicated region fallthrough
CT: control target
= control target key end

     0   :  { %s2460_s0 = inlined_call_operand.vmem [shape: f32[2,8,32], index: 0, kind: input, shape index: {}]   ;;  %s2461_s1 = inlined_call_operand.vmem [shape: f32[2,8,32], index: 1, kind: input, shape index: {}]   ;;  %s2462_s2 = inlined_call_operand.vmem [shape: f32[2,1,8], index: 2, kind: input, shape index: {}]   ;;  %s2463_s3 = inlined_call_operand.vmem [shape: bf16[4,32,8], index: 3, kind: input, shape index: {}]   ;;  %s2464_s4 = inlined_call_operand.vmem [shape: f32[4,1,8], index: 4, kind: input, shape index: {}]   ;;  %s2465_s5 = inlined_call_operand.vmem [shape: bf16[4,32,8], index: 5, kind: input, shape index: {}]   ;;  %s2466_s6 = inlined_call_operand.vmem [shape: f32[4,1,8], index: 6, kind: input, shape index: {}]   ;;  %s2467_s7 = inlined_call_operand.vmem [shape: bf16[4,32,8], index: 7, kind: input, shape index: {}]   ;;  %s2468_s8 = inlined_call_operand.vmem [shape: f32[4,1,8], index: 8, kind: input, shape index: {}]   ;;  %s2469_s9 = inlined_call_operand.vmem [shape: bf16[4,8,32], index: 9, kind: input, shape index: {}]   ;;  %s2470_s10 = inlined_call_operand.vmem [shape: f32[1,32], index: 10, kind: input, shape index: {}]   ;;  %s2471_s11 = inlined_call_operand.vmem [shape: f32[1,32], index: 11, kind: input, shape index: {}]   ;;  %s2472_s12 = inlined_call_operand.vmem [shape: f32[1,32], index: 12, kind: input, shape index: {}]   ;;  %s2473_s13 = inlined_call_operand.vmem [shape: bf16[32,64], index: 13, kind: input, shape index: {}]   ;;  %s2474_s14 = inlined_call_operand.vmem [shape: f32[1,64], index: 14, kind: input, shape index: {}]   ;;  %s2475_s15 = inlined_call_operand.vmem [shape: bf16[64,32], index: 15, kind: input, shape index: {}]   ;;  %s2476_s16 = inlined_call_operand.vmem [shape: f32[1,32], index: 16, kind: input, shape index: {}]   ;;  %s2477_s17 = inlined_call_operand.vmem [shape: f32[1,32], index: 17, kind: input, shape index: {}]   ;;  %s2478_s18 = inlined_call_operand.vmem [shape: f32[1,32], index: 18, kind: input, shape index: {}]   ;;  %s2479_s19 = inlined_call_operand.hbm [shape: f32[2,8,32], index: 19, kind: output, shape index: {}]  }
   0x1   :  { %2491 = sst [smem:[#allocation13_spill]] %s2460_s0 }
   0x2   :  { %2492 = sst [smem:[#allocation14_spill]] %s2461_s1 }
   0x3   :  { %2493 = sst [smem:[#allocation15_spill]] %s2462_s2 }
   0x4   :  { %2494 = sst [smem:[#allocation16_spill]] %s2463_s3 }
   0x5   :  { %2495 = sst [smem:[#allocation17_spill]] %s2464_s4 }
   0x6   :  { %2496 = sst [smem:[#allocation18_spill]] %s2477_s17 }
   0x7   :  { %2497 = sst [smem:[#allocation19_spill]] %s2478_s18 }
   0x8   :  { %2498 = sst [smem:[#allocation20_spill]] %s2479_s19 }
   0x9   :  { %24 = vsyncpa [#allocation3], 0 }
   0xa   :  { %26 = vsyncpa [#allocation3 + $0x1], 0  ;;  %s2133_s0 = smov 0   ;;  %s2135_s30 = smov 0  }
   0xb   :  { %s2137_s20 = smov 0   ;;  %s2139_s21 = smov 0  }
   0xc   :  { %s2141_s1 = smov 0   ;;  %s2143_s22 = smov 0  }
   0xd LB: > { %2499 = sst [smem:[#allocation5_spill]] %s2010_s0  ;;  %s1665_s2 = sadd.s32 4294967295, %s2030_s22   ;;  %s2030_s22 = sphi %s2143_s22, %s32_s22   ;;  %s2026_s1 = sphi %s2141_s1, %s2525_s1   ;;  %s2022_s21 = sphi %s2139_s21, %s2524_s21   ;;  %s2018_s20 = sphi %s2137_s20, %s2528_s20   ;;  %s2014_s30 = sphi %s2135_s30, %s2527_s30   ;;  %s2010_s0 = sphi %s2133_s0, %s2526_s0  }
   0xe   : > { %2500 = sst [smem:[#allocation6_spill]] %s2018_s20  ;;  %s1666_s23 = sadd.s32 4294967294, %s2030_s22  }
   0xf   : > { %2501 = sst [smem:[#allocation7_spill]] %s2026_s1  ;;  %s44_s24 = sadd.s32 1, %s2026_s1 }
  0x10   : > { %2502 = sst [smem:[#allocation8_spill]] %s2030_s22  ;;  %s469_s25 = sadd.s32 1, %s2018_s20 }
  0x11   : > { %p46_p0 = scmp.ge.s32.totalorder %s44_s24, 2  ;;  %p479_p1 = scmp.ne.s32.totalorder %s2018_s20, %s2014_s30 }
  0x12   : > { %p480_p2 = scmp.eq.s32.totalorder %s1665_s2, 1  ;;  %p485_p3 = scmp.ne.s32.totalorder %s2014_s30, %s2010_s0 }
  0x13   : > { %s2530_s24 = smov (%p46_p0, %s44_s24), 0  ;;  %p486_p5 = scmp.eq.s32.totalorder %s1666_s23, 1 }
  0x14   : > { %2503 = sst [smem:[#allocation9_spill]] %s2530_s24  ;;  %p2173_p4 = por %p480_p2, %p479_p1 }
  0x15   : > { %s464_s26 = ssub.s32 %s2026_s1, %s2530_s24  ;;  %p1669_p6 = scmp.ge.s32.totalorder %s2030_s22, 1 }
  0x16   : > { %s2504_s3 = scalar_select %p2173_p4, 1, 0 }
  0x17   : > { %p467_p7 = scmp.eq.s32.totalorder %s464_s26, 0  ;;  %p2180_p8 = por %p486_p5, %p485_p3 }
  0x18   : > { %2505 = sst [smem:[#allocation10_spill]] %s2504_s3  ;;  %p575_p9 = scmp.lt.s32.totalorder %s2030_s22, 3 }
  0x19   : > { %s2506_s27 = scalar_select %p2180_p8, 1, 0 }
  0x1a   : > { %s2186_s28 = scalar_select %p467_p7, %s2018_s20, %s469_s25  }
  0x1b   : > { %2507 = sst [smem:[#allocation11_spill]] %s2506_s27  ;;  %p576_p10 = pnand %p1669_p6, %p575_p9 }
  0x1c   : > { %2508 = sst [smem:[#allocation12_spill]] %s2186_s28  ;;  %p640_p11 = scmp.lt.s32.totalorder (!%p576_p10), %s2022_s21, 1 }
  0x1d   : > { %579 = sbr.rel (%p576_p10) target bundleno = 1699 (0x6a3), region = 96  ;;  %s2509_s0 = sld [smem:[#allocation16_spill]] (!%p576_p10) }
  0x1e   : > { %s2511_s22 = sld [smem:[#allocation13_spill]] (!%p576_p10)  ;;  %s1820_s29 = sshll.u32 (!%p576_p10), %s2022_s21, 3 }
  0x1f   : > { %s2512_s24 = sld [smem:[#allocation14_spill]] (!%p576_p10) }
  0x20   : > { %s2513_s4 = sld [smem:[#allocation17_spill]] (!%p576_p10) }
  0x21   : > { %s2514_s1 = sld [smem:[#allocation15_spill]] (!%p576_p10) }
  0x22   : > { %s2208_s3 = scalar_select %p640_p11, %s2022_s21, 1  ;;  %v1832_v8 = vld [vmem:[%s2465_s5 + $0x8] sm:$0xff]  ;;  %v1834_v9 = vld [vmem:[%s2465_s5 + $0x18] sm:$0xff]  ;;  %vm706_vm0 = vcmask 261120   ;;  %v1831_v13 = vld [vmem:[%s2465_s5] sm:$0xff]  ;;  %vm1073_vm1 = vcmask 64512  }
  0x23   : > { %s2510_s18 = smov %s2509_s0  ;;  %v1824_v0 = vld [vmem:[%s2509_s0 + $0x8] sm:$0xff]  ;;  %v1838_v11 = vld [vmem:[%s2465_s5 + $0x38] sm:$0xff]  ;;  %v1833_v14 = vld [vmem:[%s2465_s5 + $0x10] sm:$0xff]  ;;  %vm1216_vm2 = vcmask 1043456   ;;  %vm1505_vm7 = vcmask 523264   ;;  %s2515_s17 = sld [smem:[#allocation18_spill]] }
  0x24   : > { %v1826_v1 = vld [vmem:[%s2510_s18 + $0x18] sm:$0xff]  ;;  %v1828_v2 = vld [vmem:[%s2510_s18 + $0x28] sm:$0xff]  ;;  %716 = vmatpush.bf16.msra.mxu0 %v1824_v0  ;;  %v1823_v4 = vld [vmem:[%s2510_s18] sm:$0xff]  ;;  %s1671_s25 = sshll.u32 %s2208_s3, 3  ;;  %s2516_s27 = sld [smem:[#allocation20_spill]] }
  0x25   : > { %v1830_v3 = vld [vmem:[%s2510_s18 + $0x38] sm:$0xff]  ;;  %741 = vmatpush.bf16.msra.mxu1 %v1826_v1  ;;  %v1825_v5 = vld [vmem:[%s2510_s18 + $0x10] sm:$0xff]  ;;  %766 = vmatpush.bf16.msra.mxu2 %v1828_v2  ;;  %v1827_v6 = vld [vmem:[%s2510_s18 + $0x20] sm:$0xff]  ;;  %s646_s19 = scalar_lea.vmem %s2511_s22, %s1671_s25  ;;  %s650_s23 = scalar_lea.vmem %s2512_s24, %s1671_s25 }
  0x26   : > { %791 = vmatpush.bf16.msra.mxu3 %v1830_v3  ;;  %v1829_v7 = vld [vmem:[%s2510_s18 + $0x30] sm:$0xff]  ;;  %v1836_v10 = vld [vmem:[%s2465_s5 + $0x28] sm:$0xff]  ;;  %v2232_v12 = vld [vmem:[%s646_s19] sm:$0xff] }
  0x27   : > { %v660_v15 = vpack.c.bf16 %v2232_v12, %v2232_v12  ;;  %v1835_v16 = vld [vmem:[%s2465_s5 + $0x20] sm:$0xff]  ;;  %v1837_v17 = vld [vmem:[%s2465_s5 + $0x30] sm:$0xff]  ;;  %v1844_v20 = vld [vmem:[%s2467_s7 + $0x28] sm:$0xff]  ;;  %s653_s26 = scalar_lea.vmem %s2514_s1, %s2208_s3  ;;  %s637_s3 = sand.u32 1, %s2014_s30  }
  0x28   : > { %717 = vmatpush.bf16.msra.mxu0 %v1823_v4  ;;  %v656_v18 = vld [vmem:[%s650_s23] sm:$0xff]  ;;  %v1840_v21 = vld [vmem:[%s2467_s7 + $0x8] sm:$0xff]  ;;  %v1842_v22 = vld [vmem:[%s2467_s7 + $0x18] sm:$0xff]  ;;  %s1670_s28 = sshll.u32 %s637_s3, 3  ;;  %s2518_s1 = sld [smem:[#allocation19_spill]] }
  0x29   : > { %742 = vmatpush.bf16.msra.mxu1 %v1825_v5  ;;  %767 = vmatpush.bf16.msra.mxu2 %v1827_v6  ;;  %v661_v19 = vpack.c.bf16 %v656_v18, %v656_v18  ;;  %v1843_v23 = vld [vmem:[%s2467_s7 + $0x20] sm:$0xff]  ;;  %v1841_v25 = vld [vmem:[%s2467_s7 + $0x10] sm:$0xff]  ;;  %v1846_v26 = vld [vmem:[%s2467_s7 + $0x38] sm:$0xff]  ;;  %s1557_s25 = scalar_lea.sflag [#allocation3], %s637_s3 }
  0x2a   : > { %792 = vmatpush.bf16.msra.mxu3 %v1829_v7  ;;  %v1839_v24 = vld [vmem:[%s2467_s7] sm:$0xff]  ;;  %v1845_v27 = vld [vmem:[%s2467_s7 + $0x30] sm:$0xff]  ;;  %s1568_s0 = scalar_lea.hbm %s2516_s27, %s1820_s29 }
  0x2b   : > { %1681 = vmatmul.msk.bf16.vlgmr.msra.gmra.mxu0 %vm706_vm0, %v660_v15  ;;  %v1913_v34 = vld [vmem:[%s2466_s6] ss:$0 sm:$0xff]  ;;  %v1914_v35 = vld [vmem:[%s2466_s6 + $0x1] ss:$0 sm:$0xff]  ;;  %v1915_v46 = vld [vmem:[%s2466_s6 + $0x2] ss:$0 sm:$0xff] }
  0x2c   : > { %851 = vmatpush.bf16.msrb.mxu0 %v1832_v8  ;;  %1690 = vmatmul.msk.bf16.vlgmr.msra.gmra.mxu1 %vm706_vm0, %v660_v15  ;;  %v1910_v42 = vld [vmem:[%s2513_s4 + $0x1] ss:$0 sm:$0xff]  ;;  %v1909_v45 = vld [vmem:[%s2513_s4] ss:$0 sm:$0xff]  ;;  %v1916_v47 = vld [vmem:[%s2466_s6 + $0x3] ss:$0 sm:$0xff] }
  0x2d   : > { %876 = vmatpush.bf16.msrb.mxu1 %v1834_v9  ;;  %1699 = vmatmul.msk.bf16.vlgmr.msra.gmra.mxu2 %vm706_vm0, %v660_v15  ;;  %v1911_v59 = vld [vmem:[%s2513_s4 + $0x2] ss:$0 sm:$0xff]  ;;  %v1912_v60 = vld [vmem:[%s2513_s4 + $0x3] ss:$0 sm:$0xff]  ;;  %v1917_v8 = vld [vmem:[%s2468_s8] ss:$0 sm:$0xff] }
  0x2e   : > { %1708 = vmatmul.msk.bf16.vlgmr.msra.gmra.mxu3 %vm706_vm0, %v660_v15  ;;  %901 = vmatpush.bf16.msrb.mxu2 %v1836_v10  ;;  %v1918_v9 = vld [vmem:[%s2468_s8 + $0x1] ss:$0 sm:$0xff]  ;;  %v1919_v15 = vld [vmem:[%s2468_s8 + $0x2] ss:$0 sm:$0xff]  ;;  %s1572_s4 = sshll.u32 %s1568_s0, 4  ;;  %s1573_s4 = int_to_ptr.hbm [resolvable:$true] %s1572_s4 }
  0x2f   : > { %926 = vmatpush.bf16.msrb.mxu3 %v1838_v11  ;;  %s1966_s20 = sshra.s32 %s1573_s4, 4  ;;  %s1967_s20 = int_to_ptr.hbm [resolvable:$true] %s1966_s20 }
  0x30   : > { %852 = vmatpush.bf16.msrb.mxu0 %v1831_v13  ;;  %s1968_s29 = scalar_lea.hbm %s1967_s20, 8  ;;  %p1973_p1 = scmp.lt.s32.totalorder %s1967_s20, %s2516_s27 }
  0x31   : > { %877 = vmatpush.bf16.msrb.mxu1 %v1833_v14  ;;  %p1969_p12 = scmp.ne.s32.totalorder %s1967_s20, %s1968_s29 }
  0x32   : > { %902 = vmatpush.bf16.msrb.mxu2 %v1835_v16 }
  0x33   : > { %927 = vmatpush.bf16.msrb.mxu3 %v1837_v17  ;;  %p1970_p13 = pnand %p1969_p12, %p2173_p4 }
  0x34   : > { %983 = vmatpush.bf16.msra.mxu0 %v1840_v21 }
  0x35   : > { %1008 = vmatpush.bf16.msra.mxu1 %v1842_v22  ;;  %p1971_p0 = pneg %p1970_p13 }
  0x36   : > { %1033 = vmatpush.bf16.msra.mxu2 %v1844_v20 }
  0x37   : > { %1058 = vmatpush.bf16.msra.mxu3 %v1846_v26  ;;  %v1920_v26 = vld [vmem:[%s2468_s8 + $0x3] ss:$0 sm:$0xff] }
  0x38   : > { %984 = vmatpush.bf16.msra.mxu0 %v1839_v24 }
  0x39   : > { %1009 = vmatpush.bf16.msra.mxu1 %v1841_v25 }
  0x3a   : > { %1034 = vmatpush.bf16.msra.mxu2 %v1843_v23 }
  0x3b   : > { %1717 = vmatmul.msk.bf16.vlgmr.msrb.gmra.mxu0 %vm706_vm0, %v661_v19  ;;  %1059 = vmatpush.bf16.msra.mxu3 %v1845_v27 }
  0x3c   : > { %1726 = vmatmul.msk.bf16.vlgmr.msrb.gmra.mxu1 %vm706_vm0, %v661_v19 }
  0x3d   : > { %1735 = vmatmul.msk.bf16.vlgmr.msrb.gmra.mxu2 %vm706_vm0, %v661_v19 }
  0x3e   : > { %1744 = vmatmul.msk.bf16.vlgmr.msrb.gmra.mxu3 %vm706_vm0, %v661_v19 }
  0x4b   : > { %1753 = vmatmul.msk.bf16.vlgmr.msra.gmra.mxu0 %vm706_vm0, %v661_v19 }
  0x4c   : > { %1762 = vmatmul.msk.bf16.vlgmr.msra.gmra.mxu1 %vm706_vm0, %v661_v19 }
  0x4d   : > { %1771 = vmatmul.msk.bf16.vlgmr.msra.gmra.mxu2 %vm706_vm0, %v661_v19 }
  0x4e   : > { %1780 = vmatmul.msk.bf16.vlgmr.msra.gmra.mxu3 %vm706_vm0, %v661_v19 }
  0xa8   : > { %v719_v28 = vpop.f32.mrf.mxu0 }
  0xa9   : > { %v744_v29 = vpop.f32.mrf.mxu1  ;;  %v720_v53 = vadd.f32 %v1909_v45, %v719_v28 }
  0xaa   : > { %v745_v50 = vadd.f32 %v1910_v42, %v744_v29 }
  0xab   : > { %v1065_v63 = vpack.c.bf16 %v720_v53, %v720_v53 }
  0xac   : > { %v1066_v58 = vpack.c.bf16 %v745_v50, %v745_v50 }
  0xb0   : > { %v769_v30 = vpop.f32.mrf.mxu2  ;;  %v721_v32 = vpop.f32.mrf.mxu0 }
  0xb1   : > { %v794_v31 = vpop.f32.mrf.mxu3  ;;  %v746_v33 = vpop.f32.mrf.mxu1  ;;  %v770_v2 = vadd.f32 %v1911_v59, %v769_v30 }
  0xb2   : > { %v795_v3 = vadd.f32 %v1912_v60, %v794_v31  ;;  %v657_v33 = vld [vmem:[%s653_s26] sm:$0x1]  ;;  %s639_s26 = scalar_lea.vmem [#allocation2], %s1670_s28  ;;  %s1972_s28 = scalar_lea.hbm %s2516_s27, 16 }
  0xb3   : > { %v1067_v6 = vpack.c.bf16 %v770_v2, %v770_v2  ;;  %s1570_s21 = sshll.u32 %s639_s26, 4  ;;  %p1974_p2 = scmp.lt.s32.totalorder %s1972_s28, %s1968_s29  ;;  %s1571_s21 = int_to_ptr.vmem [resolvable:$true] %s1570_s21 }
  0xb4   : > { %v1068_v7 = vpack.c.bf16 %v795_v3, %v795_v3 }
  0xb5   : > { %p1975_p3 = por %p1974_p2, %p1973_p1 }
  0xb7   : > { %p1976_p5 = pnand %p1975_p3, %p1971_p0 }
  0xb8   : > { %v771_v36 = vpop.f32.mrf.mxu2  ;;  %v854_v38 = vpop.f32.mrf.mxu0 }
  0xb9   : > { %v796_v37 = vpop.f32.mrf.mxu3  ;;  %v879_v39 = vpop.f32.mrf.mxu1  ;;  %v855_v40 = vadd.f32 %v1913_v34, %v854_v38  ;;  %v658_v34 = vsub.f32 1.0, %v657_v33 }
  0xba   : > { %v880_v41 = vadd.f32 %v1914_v35, %v879_v39 }
  0xbb   : > { %v1069_v43 = vpack.c.bf16 %v855_v40, %v855_v40  ;;  %v659_v35 = vmul.f32 -10000.0, %v658_v34  ;;  %v1296_v34 = vld [vmem:[%s2469_s9 + $0x8] sm:$0xf] }
  0xbc   : > { %v1070_v44 = vpack.c.bf16 %v880_v41, %v880_v41 }
  0xbd   : > { %v1078_v48 = vsel %vm1073_vm1, %v1069_v43, 0  ;;  %v1155_v36 = vperm.slane %v659_v35, 0  ;;  %v1340_v35 = vsel %vm1216_vm2, %v1296_v34, 0  ;;  %v1849_v34 = vld [vmem:[%s2475_s15] sm:$0xff] }
  0xbe   : > { %v1097_v49 = vsel %vm1073_vm1, %v1070_v44, 0  ;;  %1087 = vmatpush.bf16.xpose.msrb.mxu0 %v1078_v48 }
  0xbf   : > { %1106 = vmatpush.bf16.xpose.msrb.mxu1 %v1097_v49 }
  0xc0   : > { %v904_v51 = vpop.f32.mrf.mxu2  ;;  %v856_v56 = vpop.f32.mrf.mxu0 }
  0xc1   : > { %v929_v52 = vpop.f32.mrf.mxu3  ;;  %v905_v54 = vadd.f32 %v1915_v46, %v904_v51  ;;  %v881_v57 = vpop.f32.mrf.mxu1 }
  0xc2   : > { %v930_v55 = vadd.f32 %v1916_v47, %v929_v52 }
  0xc3   : > { %v1071_v61 = vpack.c.bf16 %v905_v54, %v905_v54 }
  0xc4   : > { %v1072_v62 = vpack.c.bf16 %v930_v55, %v930_v55 }
  0xc5   : > { %v1116_v0 = vsel %vm1073_vm1, %v1071_v61, 0  ;;  %1781 = vmatmul.msk.bf16.vlgmr.msrb.gmra.mxu0 %vm1073_vm1, %v1065_v63 }
  0xc6   : > { %v1135_v1 = vsel %vm1073_vm1, %v1072_v62, 0  ;;  %1125 = vmatpush.bf16.xpose.msrb.mxu2 %v1116_v0  ;;  %1782 = vmatmul.msk.bf16.vlgmr.msrb.gmra.mxu1 %vm1073_vm1, %v1066_v58 }
  0xc7   : > { %1144 = vmatpush.bf16.xpose.msrb.mxu3 %v1135_v1 }
  0xc8   : > { %v906_v4 = vpop.f32.mrf.mxu2  ;;  %v986_v10 = vpop.f32.mrf.mxu0 }
  0xc9   : > { %v931_v5 = vpop.f32.mrf.mxu3  ;;  %v1011_v11 = vpop.f32.mrf.mxu1  ;;  %v987_v13 = vadd.f32 %v1917_v8, %v986_v10 }
  0xca   : > { %v1012_v14 = vadd.f32 %v1918_v9, %v1011_v11 }
  0xcb   : > { %v1209_v16 = vpack.c.bf16 %v987_v13, %v987_v13 }
  0xcc   : > { %v1210_v17 = vpack.c.bf16 %v1012_v14, %v1012_v14 }
  0xcd   : > { %1783 = vmatmul.msk.bf16.vlgmr.msrb.gmra.mxu2 %vm1073_vm1, %v1067_v6  ;;  %v1218_v19 = vsel %vm1216_vm2, %v1209_v16, 0 }
  0xce   : > { %1784 = vmatmul.msk.bf16.vlgmr.msrb.gmra.mxu3 %vm1073_vm1, %v1068_v7  ;;  %v1237_v20 = vsel %vm1216_vm2, %v1210_v17, 0  ;;  %1227 = vmatpush.bf16.msra.mxu0 %v1218_v19 }
  0xcf   : > { %1246 = vmatpush.bf16.msra.mxu1 %v1237_v20 }
  0xd0   : > { %v1036_v18 = vpop.f32.mrf.mxu2  ;;  %v988_v23 = vpop.f32.mrf.mxu0 }
  0xd1   : > { %v1037_v21 = vadd.f32 %v1919_v15, %v1036_v18  ;;  %v1013_v24 = vpop.f32.mrf.mxu1  ;;  %v1061_v27 = vpop.f32.mrf.mxu3 }
  0xd2   : > { %v1062_v29 = vadd.f32 %v1920_v26, %v1061_v27 }
  0xd3   : > { %v1211_v22 = vpack.c.bf16 %v1037_v21, %v1037_v21 }
  0xd4   : > { %v1212_v30 = vpack.c.bf16 %v1062_v29, %v1062_v29 }
  0xd5   : > { %v1256_v25 = vsel %vm1216_vm2, %v1211_v22, 0 }
  0xd6   : > { %1265 = vmatpush.bf16.msra.mxu2 %v1256_v25  ;;  %v1275_v31 = vsel %vm1216_vm2, %v1212_v30, 0  ;;  %v1294_v30 = vld [vmem:[%s2469_s9] sm:$0xf] }
  0xd7   : > { %1284 = vmatpush.bf16.msra.mxu3 %v1275_v31  ;;  %v1302_v31 = vsel %vm1216_vm2, %v1294_v30, 0 }
  0xd8   : > { %v1038_v28 = vpop.f32.mrf.mxu2  ;;  %1311 = vmatpush.bf16.msrb.mxu0 %v1302_v31  ;;  %v1852_v31 = vld [vmem:[%s2475_s15 + $0x18] sm:$0xff] }
  0xd9   : > { %v1063_v32 = vpop.f32.mrf.mxu3 }
  0xda   : > { %v1295_v32 = vld [vmem:[%s2469_s9 + $0x4] sm:$0xf]  ;;  %1349 = vmatpush.bf16.msrb.mxu2 %v1340_v35  ;;  %v1924_v35 = vld [vmem:[%s2474_s14] ss:$0 sm:$0xff] }
  0xdb   : > { %v1321_v33 = vsel %vm1216_vm2, %v1295_v32, 0  ;;  %v1851_v32 = vld [vmem:[%s2475_s15 + $0x10] sm:$0xff] }
  0xdc   : > { %1330 = vmatpush.bf16.msrb.mxu1 %v1321_v33  ;;  %v1850_v33 = vld [vmem:[%s2475_s15 + $0x8] sm:$0xff] }
 0x142   : > { %v1089_v37 = vpop.f32.mrf.mxu0 }
 0x143   : > { %v1108_v38 = vpop.f32.mrf.mxu1  ;;  %v1150_v39 = vmul.f32 0.35355338, %v1089_v37 }
 0x144   : > { %v1151_v41 = vmul.f32 0.35355338, %v1108_v38 }
 0x145   : > { %v1157_v40 = vadd.f32 %v1155_v36, %v1150_v39 }
 0x146   : > { %v1158_v45 = vadd.f32 %v1155_v36, %v1151_v41 }
 0x147   : > { %v1161_v42 = vsel %vm1073_vm1, %v1157_v40, -inf }
 0x148   : > { %1162 = vmax.xlane.f32.xlu1 %v1161_v42  ;;  %v1164_v49 = vsel %vm1073_vm1, %v1158_v45, -inf }
 0x14a   : > { %v1091_v43 = vpop.f32.mrf.mxu0 }
 0x14b   : > { %v1110_v44 = vpop.f32.mrf.mxu1 }
 0x150   : > { %v1127_v46 = vpop.f32.mrf.mxu2  ;;  %1165 = vmax.xlane.f32.xlu1 %v1164_v49 }
 0x151   : > { %v1146_v47 = vpop.f32.mrf.mxu3  ;;  %v1152_v48 = vmul.f32 0.35355338, %v1127_v46 }
 0x152   : > { %v1153_v51 = vmul.f32 0.35355338, %v1146_v47 }
 0x153   : > { %v1159_v50 = vadd.f32 %v1155_v36, %v1152_v48 }
 0x154   : > { %v1160_v55 = vadd.f32 %v1155_v36, %v1153_v51  ;;  %v1297_v36 = vld [vmem:[%s2469_s9 + $0xc] sm:$0xf] }
 0x155   : > { %v1167_v52 = vsel %vm1073_vm1, %v1159_v50, -inf  ;;  %v1359_v37 = vsel %vm1216_vm2, %v1297_v36, 0 }
 0x156   : > { %1168 = vmax.xlane.f32.xlu0 %v1167_v52  ;;  %v1170_v56 = vsel %vm1073_vm1, %v1160_v55, -inf  ;;  %1368 = vmatpush.bf16.msrb.mxu3 %v1359_v37 }
 0x158   : > { %v1129_v53 = vpop.f32.mrf.mxu2 }
 0x159   : > { %v1148_v54 = vpop.f32.mrf.mxu3 }
 0x15e   : > { %1171 = vmax.xlane.f32.xlu0 %v1170_v56 }
 0x1bb   : > { %v1163_v57 = vpop.xlane.xlu1 %1162 }
 0x1bc   : > { %v1173_v58 = vsub.f32 %v1157_v40, %v1163_v57  ;;  %v1921_v57 = vld [vmem:[%s2470_s10] ss:$0 sm:$0xff] }
 0x1be   : > { %v1177_v59 = vmul.f32 1.442695, %v1173_v58 }
 0x1c0   : > { %1928 = vpow2.f32 %v1177_v59 }
 0x1c3   : > { %v1166_v60 = vpop.xlane.xlu1 %1165 }
 0x1c4   : > { %v1174_v61 = vsub.f32 %v1158_v45, %v1166_v60 }
 0x1c6   : > { %v1929_v62 = vpop.eup %1928  ;;  %v1179_v63 = vmul.f32 1.442695, %v1174_v61 }
 0x1c7   : > { %v1185_v1 = vsel %vm1073_vm1, %v1929_v62, 0.0 }
 0x1c8   : > { %1930 = vpow2.f32 %v1179_v63  ;;  %1186 = vadd.xlane.f32.xlu0 %v1185_v1  ;;  %v2032_v1 = vmov 32.0  }
 0x1c9   : > { %v1169_v0 = vpop.xlane.xlu0 %1168 }
 0x1ca   : > { %v1175_v2 = vsub.f32 %v1159_v50, %v1169_v0 }
 0x1cc   : > { %v1181_v3 = vmul.f32 1.442695, %v1175_v2 }
 0x1ce   : > { %1932 = vpow2.f32 %v1181_v3  ;;  %v1931_v4 = vpop.eup %1930 }
 0x1cf   : > { %v1188_v6 = vsel %vm1073_vm1, %v1931_v4, 0.0 }
 0x1d0   : > { %1189 = vadd.xlane.f32.xlu1 %v1188_v6 }
 0x1d1   : > { %v1172_v5 = vpop.xlane.xlu0 %1171 }
 0x1d2   : > { %v1176_v7 = vsub.f32 %v1160_v55, %v1172_v5 }
 0x1d4   : > { %v1933_v8 = vpop.eup %1932  ;;  %v1183_v9 = vmul.f32 1.442695, %v1176_v7 }
 0x1d5   : > { %v1191_v10 = vsel %vm1073_vm1, %v1933_v8, 0.0 }
 0x1d6   : > { %1934 = vpow2.f32 %v1183_v9  ;;  %1192 = vadd.xlane.f32.xlu2 %v1191_v10 }
 0x1dc   : > { %v1935_v11 = vpop.eup %1934 }
 0x1dd   : > { %v1194_v13 = vsel %vm1073_vm1, %v1935_v11, 0.0 }
 0x1de   : > { %1195 = vadd.xlane.f32.xlu2 %v1194_v13  ;;  %v1848_v13 = vld [vmem:[%s2473_s13 + $0x8] sm:$0xff] }
 0x23b   : > { %v1187_v14 = vpop.xlane.xlu0 %1186 }
 0x23c   : > { %1936 = vrcp.f32 %v1187_v14  ;;  %v1847_v14 = vld [vmem:[%s2473_s13] sm:$0xff] }
 0x242   : > { %v1937_v15 = vpop.eup %1936 }
 0x243   : > { %v1201_v16 = vmul.f32 %v1937_v15, %v1929_v62  ;;  %v1190_v17 = vpop.xlane.xlu1 %1189 }
 0x244   : > { %1938 = vrcp.f32 %v1190_v17 }
 0x245   : > { %v1205_v18 = vpack.c.bf16 %v1201_v16, %v1201_v16 }
 0x247   : > { %1785 = vmatmul.msk.bf16.vlgmr.msra.gmra.mxu0 %vm1073_vm1, %v1205_v18 }
 0x248   : > { %1452 = vmatpush.bf16.msra.mxu0 %v1848_v13 }
 0x249   : > { %v1193_v19 = vpop.xlane.xlu2 %1192 }
 0x24a   : > { %1940 = vrcp.f32 %v1193_v19  ;;  %v1939_v20 = vpop.eup %1938 }
 0x24b   : > { %v1202_v21 = vmul.f32 %v1939_v20, %v1931_v4 }
 0x24c   : > { %1453 = vmatpush.bf16.msra.mxu0 %v1847_v14 }
 0x24d   : > { %v1206_v22 = vpack.c.bf16 %v1202_v21, %v1202_v21 }
 0x24f   : > { %1786 = vmatmul.msk.bf16.vlgmr.msra.gmra.mxu1 %vm1073_vm1, %v1206_v22 }
 0x250   : > { %v1941_v23 = vpop.eup %1940  ;;  %1513 = vmatpush.bf16.msra.mxu1 %v1852_v31 }
 0x251   : > { %v1203_v24 = vmul.f32 %v1941_v23, %v1933_v8  ;;  %v1196_v25 = vpop.xlane.xlu2 %1195 }
 0x252   : > { %1942 = vrcp.f32 %v1196_v25 }
 0x253   : > { %v1207_v26 = vpack.c.bf16 %v1203_v24, %v1203_v24  ;;  %1944 = vrcp.f32 %v2032_v1  ;;  %v1922_v24 = vld [vmem:[%s2471_s11] ss:$0 sm:$0xff] }
 0x254   : > { %1514 = vmatpush.bf16.msra.mxu1 %v1851_v32 }
 0x255   : > { %1787 = vmatmul.msk.bf16.vlgmr.msra.gmra.mxu2 %vm1073_vm1, %v1207_v26  ;;  %v1923_v26 = vld [vmem:[%s2472_s12] ss:$0 sm:$0xff] }
 0x258   : > { %v1943_v27 = vpop.eup %1942  ;;  %1515 = vmatpush.bf16.msra.mxu1 %v1850_v33 }
 0x259   : > { %v1204_v28 = vmul.f32 %v1943_v27, %v1935_v11  ;;  %v1945_v2 = vpop.eup %1944 }
 0x25a   : > { %v1389_v3 = vmul.f32 32.0, %v1945_v2  ;;  %vm1393_vm3 = vweird.f32 %v1945_v2 }
 0x25b   : > { %v1208_v29 = vpack.c.bf16 %v1204_v28, %v1204_v28 }
 0x25c   : > { %v1390_v4 = vsub.f32 1.0, %v1389_v3  ;;  %1516 = vmatpush.bf16.msra.mxu1 %v1849_v34 }
 0x25d   : > { %1788 = vmatmul.msk.bf16.vlgmr.msra.gmra.mxu3 %vm1073_vm1, %v1208_v29 }
 0x25e   : > { %v1391_v5 = vmul.f32 %v1945_v2, %v1390_v4 }
 0x260   : > { %v1392_v6 = vadd.f32 %v1945_v2, %v1391_v5  ;;  %v1926_v5 = vld [vmem:[%s2515_s17] ss:$0 sm:$0xff] }
 0x262   : > { %v2376_v7 = vsel %vm1393_vm3, %v1945_v2, %v1392_v6 }
 0x2c4   : > { %v1229_v38 = vpop.f32.mrf.mxu0 }
 0x2c5   : > { %v1290_v39 = vpack.c.bf16 %v1229_v38, %v1229_v38 }
 0x2c7   : > { %1789 = vmatmul.msk.bf16.vlgmr.msrb.gmra.mxu0 %vm1073_vm1, %v1290_v39 }
 0x2cc   : > { %v1231_v40 = vpop.f32.mrf.mxu0  ;;  %v1248_v41 = vpop.f32.mrf.mxu1 }
 0x2cd   : > { %v1291_v42 = vpack.c.bf16 %v1248_v41, %v1248_v41 }
 0x2cf   : > { %1790 = vmatmul.msk.bf16.vlgmr.msrb.gmra.mxu1 %vm1073_vm1, %v1291_v42 }
 0x2d4   : > { %v1250_v43 = vpop.f32.mrf.mxu1 }
 0x2d8   : > { %v1267_v44 = vpop.f32.mrf.mxu2 }
 0x2d9   : > { %v1292_v45 = vpack.c.bf16 %v1267_v44, %v1267_v44 }
 0x2db   : > { %1791 = vmatmul.msk.bf16.vlgmr.msrb.gmra.mxu2 %vm1073_vm1, %v1292_v45 }
 0x2e0   : > { %v1269_v46 = vpop.f32.mrf.mxu2  ;;  %v1286_v47 = vpop.f32.mrf.mxu3 }
 0x2e1   : > { %v1293_v48 = vpack.c.bf16 %v1286_v47, %v1286_v47 }
 0x2e3   : > { %1792 = vmatmul.msk.bf16.vlgmr.msrb.gmra.mxu3 %vm1073_vm1, %v1293_v48 }
 0x2e8   : > { %v1288_v49 = vpop.f32.mrf.mxu3 }
 0x2e9   : > { %v1925_v49 = vld [vmem:[%s2476_s16] ss:$0 sm:$0xff] }
 0x344   : > { %v1313_v50 = vpop.f32.mrf.mxu0 }
 0x34c   : > { %v1315_v51 = vpop.f32.mrf.mxu0  ;;  %v1332_v52 = vpop.f32.mrf.mxu1 }
 0x34d   : > { %v1374_v55 = vadd.f32 %v1332_v52, %v1313_v50 }
 0x354   : > { %v1334_v53 = vpop.f32.mrf.mxu1 }
 0x35e   : > { %v1351_v54 = vpop.f32.mrf.mxu2 }
 0x35f   : > { %v1375_v56 = vadd.f32 %v1374_v55, %v1351_v54 }
 0x366   : > { %v1353_v58 = vpop.f32.mrf.mxu2  ;;  %v1370_v59 = vpop.f32.mrf.mxu3 }
 0x367   : > { %v1376_v60 = vadd.f32 %v1375_v56, %v1370_v59 }
 0x369   : > { %v1381_v61 = vadd.f32 %v1921_v57, %v1376_v60 }
 0x36b   : > { %v1382_v62 = vadd.f32 %v1381_v61, %v2232_v12 }
 0x36d   : > { %v1385_v63 = vsel %vm706_vm0, %v1382_v62, 0.0 }
 0x36e   : > { %v1372_v0 = vpop.f32.mrf.mxu3  ;;  %1386 = vadd.xlane.f32.xlu2 %v1385_v63 }
 0x3e1   : > { %v1387_v8 = vpop.xlane.xlu2 %1386 }
 0x3e2   : > { %v1395_v9 = vmul.f32 %v2376_v7, %v1387_v8  ;;  %v1927_v8 = vld [vmem:[%s2518_s1] ss:$0 sm:$0xff] }
 0x3e4   : > { %v1396_v10 = vsub.f32 %v1382_v62, %v1395_v9 }
 0x3e6   : > { %v1397_v11 = vmul.f32 %v1396_v10, %v1396_v10 }
 0x3e8   : > { %v1398_v12 = vsel %vm706_vm0, %v1397_v11, 0.0 }
 0x3e9   : > { %1399 = vadd.xlane.f32.xlu0 %v1398_v12 }
 0x45c   : > { %v1400_v15 = vpop.xlane.xlu0 %1399 }
 0x45d   : > { %v1401_v16 = vmul.f32 %v1400_v15, %v2376_v7 }
 0x45f   : > { %v1402_v17 = vadd.f32 1e-12, %v1401_v16 }
 0x461   : > { %1946 = vrsqrt.f32 %v1402_v17  ;;  %vm1409_vm5 = vweird.f32 %v1402_v17 }
 0x467   : > { %v1947_v18 = vpop.eup %1946 }
 0x468   : > { %v1404_v19 = vmul.f32 %v1947_v18, %v1402_v17  ;;  %vm1410_vm4 = vweird.f32 %v1947_v18 }
 0x469   : > { %vm1411_vm6 = vmor %vm1409_vm5, %vm1410_vm4 }
 0x46a   : > { %v1405_v20 = vmul.f32 %v1947_v18, %v1404_v19 }
 0x46c   : > { %v1406_v21 = vmul.f32 0.5, %v1405_v20 }
 0x46e   : > { %v1407_v22 = vsub.f32 1.5, %v1406_v21 }
 0x470   : > { %v1408_v23 = vmul.f32 %v1947_v18, %v1407_v22 }
 0x472   : > { %v1412_v25 = vsel %vm1411_vm6, %v1947_v18, %v1408_v23 }
 0x473   : > { %v1413_v27 = vmul.f32 %v1412_v25, %v1396_v10 }
 0x475   : > { %v1417_v28 = vmul.f32 %v1922_v24, %v1413_v27 }
 0x477   : > { %v1421_v29 = vadd.f32 %v1923_v26, %v1417_v28 }
 0x479   : > { %v1422_v30 = vpack.c.bf16 %v1421_v29, %v1421_v29 }
 0x47b   : > { %1801 = vmatmul.msk.bf16.vlgmr.msra.gmra.mxu0 %vm706_vm0, %v1422_v30 }
 0x4f8   : > { %v1455_v36 = vpop.f32.mrf.mxu0 }
 0x4f9   : > { %v1456_v37 = vadd.f32 %v1924_v35, %v1455_v36 }
 0x4fb   : > { %v1460_v38 = vmul.f32 %v1456_v37, %v1456_v37  ;;  %v1459_v45 = vmul.f32 0.5, %v1456_v37 }
 0x4fd   : > { %v1461_v39 = vmul.f32 %v1460_v38, %v1456_v37 }
 0x4ff   : > { %v1462_v40 = vmul.f32 0.044715, %v1461_v39 }
 0x500   : > { %v1457_v41 = vpop.f32.mrf.mxu0 }
 0x501   : > { %v1463_v42 = vadd.f32 %v1462_v40, %v1456_v37 }
 0x503   : > { %v1464_v43 = vmul.f32 0.7978846, %v1463_v42 }
 0x505   : > { %1948 = vtanh.f32 %v1464_v43 }
 0x50b   : > { %v1949_v44 = vpop.eup %1948 }
 0x50c   : > { %v1466_v46 = vadd.f32 1.0, %v1949_v44 }
 0x50e   : > { %v1467_v47 = vmul.f32 %v1466_v46, %v1459_v45 }
 0x510   : > { %v1468_v48 = vpack.c.bf16 %v1467_v47, %v1467_v47 }
 0x512   : > { %1818 = vmatmul.msk.bf16.vlgmr.msra.gmra.mxu1 %vm1505_vm7, %v1468_v48 }
 0x58f   : > { %v1518_v50 = vpop.f32.mrf.mxu1 }
 0x590   : > { %v1519_v51 = vadd.f32 %v1925_v49, %v1518_v50 }
 0x592   : > { %v1522_v52 = vadd.f32 %v1519_v51, %v1421_v29 }
 0x594   : > { %v1525_v53 = vsel %vm706_vm0, %v1522_v52, 0.0 }
 0x595   : > { %1526 = vadd.xlane.f32.xlu1 %v1525_v53 }
 0x597   : > { %v1520_v54 = vpop.f32.mrf.mxu1 }
 0x608   : > { %v1527_v55 = vpop.xlane.xlu1 %1526 }
 0x609   : > { %v1528_v56 = vmul.f32 %v1527_v55, %v2376_v7 }
 0x60b   : > { %v1529_v57 = vsub.f32 %v1522_v52, %v1528_v56 }
 0x60d   : > { %v1530_v58 = vmul.f32 %v1529_v57, %v1529_v57 }
 0x60f   : > { %v1531_v59 = vsel %vm706_vm0, %v1530_v58, 0.0 }
 0x610   : > { %1532 = vadd.xlane.f32.xlu2 %v1531_v59 }
 0x683   : > { %v1533_v60 = vpop.xlane.xlu2 %1532 }
 0x684   : > { %v1534_v61 = vmul.f32 %v1533_v60, %v2376_v7 }
 0x686   : > { %v1535_v62 = vadd.f32 1e-12, %v1534_v61 }
 0x688   : > { %1950 = vrsqrt.f32 %v1535_v62  ;;  %vm1542_vm9 = vweird.f32 %v1535_v62 }
 0x68e   : > { %v1951_v63 = vpop.eup %1950 }
 0x68f   : > { %v1537_v0 = vmul.f32 %v1951_v63, %v1535_v62  ;;  %vm1543_vm8 = vweird.f32 %v1951_v63 }
 0x690   : > { %vm1544_vm10 = vmor %vm1542_vm9, %vm1543_vm8 }
 0x691   : > { %v1538_v1 = vmul.f32 %v1951_v63, %v1537_v0 }
 0x693   : > { %v1539_v2 = vmul.f32 0.5, %v1538_v1 }
 0x695   : > { %v1540_v3 = vsub.f32 1.5, %v1539_v2 }
 0x697   : > { %v1541_v4 = vmul.f32 %v1951_v63, %v1540_v3 }
 0x699   : > { %v1545_v6 = vsel %vm1544_vm10, %v1951_v63, %v1541_v4 }
 0x69a   : > { %v1546_v7 = vmul.f32 %v1545_v6, %v1529_v57 }
 0x69c   : > { %v1550_v9 = vmul.f32 %v1926_v5, %v1546_v7 }
 0x69e   : > { %v1554_v10 = vadd.f32 %v1927_v8, %v1550_v9 }
 0x6a0   : > { %1555 = vst.msk [vmem:[%s639_s26] sm:$0xff] %vm706_vm0, %v1554_v10 }
 0x6a1   : > { %1979 = shalt.err (!%p1976_p5)
}
 0x6a2   : > { %1853 = dma.vmem_to_hbm [thread:$0]  (%p2173_p4), %s1571_s21, 128, %s1573_s4, %s1557_s25  }
 0x6a3 PF: > { %s2519_s3 = sld [smem:[#allocation8_spill]] }
 0x6a4   : > { %s2520_s24 = sld [smem:[#allocation5_spill]] }
 0x6a9   : > { %p1859_p6 = scmp.ge.s32.totalorder %s2519_s3, 2 }
 0x6aa   : > { %s1584_s1 = sand.u32 1, %s2520_s24  }
 0x6ab   : > { %p1856_p7 = pnand %p1859_p6, %p2180_p8  ;;  %s1585_s26 = scalar_lea.sflag [#allocation3], %s1584_s1 }
 0x6ad   : > { %p1857_p9 = pneg %p1856_p7 }
 0x6af   : > { %2005 = dma.done.wait (%p1857_p9), %s1585_s26, 128  }
 0x6b0   : > { %2007 = vsyncadd (%p1857_p9), %s1585_s26, 4294967168  ;;  %s32_s22 = sadd.s32 1, %s2519_s3   ;;  %s2522_s20 = sld [smem:[#allocation6_spill]] }
 0x6b1   : > { %p29_p10 = scmp.ge.s32.totalorder %s32_s22, 4   ;;  %s2523_s29 = sld [smem:[#allocation12_spill]] }
 0x6b2   : > { %s2524_s21 = sld [smem:[#allocation7_spill]]  ;;  %s2526_s0 = smov %s2014_s30 }
 0x6b3   : > { %s2525_s1 = sld [smem:[#allocation9_spill]]  ;;  %31 = sbr.rel (!%p29_p10) target bundleno = 13 (0xd), region = 137 }
 0x6b6   : > { %s2527_s30 = smov %s2522_s20 }
 0x6b7   : > { %s2528_s20 = smov %s2523_s29 }
 0x6b8   :  { %1591 = vsyncpa [#allocation3], 1 }
 0x6b9   :  { %1593 = vsyncpa [#allocation3 + $0x1], 1 }

// kernel: tpu_custom_call.1
= control target key start
LH: loop header
LB: loop body
LE: loop exit
PB: predicated region body
PF: predicated region fallthrough
CT: control target
= control target key end

     0   :  { %s2460_s0 = inlined_call_operand.vmem [shape: f32[2,8,32], index: 0, kind: input, shape index: {}]   ;;  %s2461_s1 = inlined_call_operand.vmem [shape: f32[2,8,32], index: 1, kind: input, shape index: {}]   ;;  %s2462_s2 = inlined_call_operand.vmem [shape: f32[2,1,8], index: 2, kind: input, shape index: {}]   ;;  %s2463_s3 = inlined_call_operand.vmem [shape: bf16[4,32,8], index: 3, kind: input, shape index: {}]   ;;  %s2464_s4 = inlined_call_operand.vmem [shape: f32[4,1,8], index: 4, kind: input, shape index: {}]   ;;  %s2465_s5 = inlined_call_operand.vmem [shape: bf16[4,32,8], index: 5, kind: input, shape index: {}]   ;;  %s2466_s6 = inlined_call_operand.vmem [shape: f32[4,1,8], index: 6, kind: input, shape index: {}]   ;;  %s2467_s7 = inlined_call_operand.vmem [shape: bf16[4,32,8], index: 7, kind: input, shape index: {}]   ;;  %s2468_s8 = inlined_call_operand.vmem [shape: f32[4,1,8], index: 8, kind: input, shape index: {}]   ;;  %s2469_s9 = inlined_call_operand.vmem [shape: bf16[4,8,32], index: 9, kind: input, shape index: {}]   ;;  %s2470_s10 = inlined_call_operand.vmem [shape: f32[1,32], index: 10, kind: input, shape index: {}]   ;;  %s2471_s11 = inlined_call_operand.vmem [shape: f32[1,32], index: 11, kind: input, shape index: {}]   ;;  %s2472_s12 = inlined_call_operand.vmem [shape: f32[1,32], index: 12, kind: input, shape index: {}]   ;;  %s2473_s13 = inlined_call_operand.vmem [shape: bf16[32,64], index: 13, kind: input, shape index: {}]   ;;  %s2474_s14 = inlined_call_operand.vmem [shape: f32[1,64], index: 14, kind: input, shape index: {}]   ;;  %s2475_s15 = inlined_call_operand.vmem [shape: bf16[64,32], index: 15, kind: input, shape index: {}]   ;;  %s2476_s16 = inlined_call_operand.vmem [shape: f32[1,32], index: 16, kind: input, shape index: {}]   ;;  %s2477_s17 = inlined_call_operand.vmem [shape: f32[1,32], index: 17, kind: input, shape index: {}]   ;;  %s2478_s18 = inlined_call_operand.vmem [shape: f32[1,32], index: 18, kind: input, shape index: {}]   ;;  %s2479_s19 = inlined_call_operand.hbm [shape: f32[2,8,32], index: 19, kind: output, shape index: {}]  }
   0x1   :  { %2491 = sst [smem:[#allocation13_spill]] %s2460_s0 }
   0x2   :  { %2492 = sst [smem:[#allocation14_spill]] %s2461_s1 }
   0x3   :  { %2493 = sst [smem:[#allocation15_spill]] %s2462_s2 }
   0x4   :  { %2494 = sst [smem:[#allocation16_spill]] %s2463_s3 }
   0x5   :  { %2495 = sst [smem:[#allocation17_spill]] %s2464_s4 }
   0x6   :  { %2496 = sst [smem:[#allocation18_spill]] %s2477_s17 }
   0x7   :  { %2497 = sst [smem:[#allocation19_spill]] %s2478_s18 }
   0x8   :  { %2498 = sst [smem:[#allocation20_spill]] %s2479_s19 }
   0x9   :  { %24 = vsyncpa [#allocation3], 0 }
   0xa   :  { %26 = vsyncpa [#allocation3 + $0x1], 0  ;;  %s2133_s0 = smov 0   ;;  %s2135_s30 = smov 0  }
   0xb   :  { %s2137_s20 = smov 0   ;;  %s2139_s21 = smov 0  }
   0xc   :  { %s2141_s1 = smov 0   ;;  %s2143_s22 = smov 0  }
   0xd LB: > { %2499 = sst [smem:[#allocation5_spill]] %s2010_s0  ;;  %s1665_s2 = sadd.s32 4294967295, %s2030_s22   ;;  %s2030_s22 = sphi %s2143_s22, %s32_s22   ;;  %s2026_s1 = sphi %s2141_s1, %s2525_s1   ;;  %s2022_s21 = sphi %s2139_s21, %s2524_s21   ;;  %s2018_s20 = sphi %s2137_s20, %s2528_s20   ;;  %s2014_s30 = sphi %s2135_s30, %s2527_s30   ;;  %s2010_s0 = sphi %s2133_s0, %s2526_s0  }
   0xe   : > { %2500 = sst [smem:[#allocation6_spill]] %s2018_s20  ;;  %s1666_s23 = sadd.s32 4294967294, %s2030_s22  }
   0xf   : > { %2501 = sst [smem:[#allocation7_spill]] %s2026_s1  ;;  %s44_s24 = sadd.s32 1, %s2026_s1 }
  0x10   : > { %2502 = sst [smem:[#allocation8_spill]] %s2030_s22  ;;  %s469_s25 = sadd.s32 1, %s2018_s20 }
  0x11   : > { %p46_p0 = scmp.ge.s32.totalorder %s44_s24, 2  ;;  %p479_p1 = scmp.ne.s32.totalorder %s2018_s20, %s2014_s30 }
  0x12   : > { %p480_p2 = scmp.eq.s32.totalorder %s1665_s2, 1  ;;  %p485_p3 = scmp.ne.s32.totalorder %s2014_s30, %s2010_s0 }
  0x13   : > { %s2530_s24 = smov (%p46_p0, %s44_s24), 0  ;;  %p486_p5 = scmp.eq.s32.totalorder %s1666_s23, 1 }
  0x14   : > { %2503 = sst [smem:[#allocation9_spill]] %s2530_s24  ;;  %p2173_p4 = por %p480_p2, %p479_p1 }
  0x15   : > { %s464_s26 = ssub.s32 %s2026_s1, %s2530_s24  ;;  %p1669_p6 = scmp.ge.s32.totalorder %s2030_s22, 1 }
  0x16   : > { %s2504_s3 = scalar_select %p2173_p4, 1, 0 }
  0x17   : > { %p467_p7 = scmp.eq.s32.totalorder %s464_s26, 0  ;;  %p2180_p8 = por %p486_p5, %p485_p3 }
  0x18   : > { %2505 = sst [smem:[#allocation10_spill]] %s2504_s3  ;;  %p575_p9 = scmp.lt.s32.totalorder %s2030_s22, 3 }
  0x19   : > { %s2506_s27 = scalar_select %p2180_p8, 1, 0 }
  0x1a   : > { %s2186_s28 = scalar_select %p467_p7, %s2018_s20, %s469_s25  }
  0x1b   : > { %2507 = sst [smem:[#allocation11_spill]] %s2506_s27  ;;  %p576_p10 = pnand %p1669_p6, %p575_p9 }
  0x1c   : > { %2508 = sst [smem:[#allocation12_spill]] %s2186_s28  ;;  %p640_p11 = scmp.lt.s32.totalorder (!%p576_p10), %s2022_s21, 1 }
  0x1d   : > { %579 = sbr.rel (%p576_p10) target bundleno = 1699 (0x6a3), region = 96  ;;  %s2509_s0 = sld [smem:[#allocation16_spill]] (!%p576_p10) }
  0x1e   : > { %s2511_s22 = sld [smem:[#allocation13_spill]] (!%p576_p10)  ;;  %s1820_s29 = sshll.u32 (!%p576_p10), %s2022_s21, 3 }
  0x1f   : > { %s2512_s24 = sld [smem:[#allocation14_spill]] (!%p576_p10) }
  0x20   : > { %s2513_s4 = sld [smem:[#allocation17_spill]] (!%p576_p10) }
  0x21   : > { %s2514_s1 = sld [smem:[#allocation15_spill]] (!%p576_p10) }
  0x22   : > { %s2208_s3 = scalar_select %p640_p11, %s2022_s21, 1  ;;  %v1832_v8 = vld [vmem:[%s2465_s5 + $0x8] sm:$0xff]  ;;  %v1834_v9 = vld [vmem:[%s2465_s5 + $0x18] sm:$0xff]  ;;  %vm706_vm0 = vcmask 261120   ;;  %v1831_v13 = vld [vmem:[%s2465_s5] sm:$0xff]  ;;  %vm1073_vm1 = vcmask 64512  }
  0x23   : > { %s2510_s18 = smov %s2509_s0  ;;  %v1824_v0 = vld [vmem:[%s2509_s0 + $0x8] sm:$0xff]  ;;  %v1838_v11 = vld [vmem:[%s2465_s5 + $0x38] sm:$0xff]  ;;  %v1833_v14 = vld [vmem:[%s2465_s5 + $0x10] sm:$0xff]  ;;  %vm1216_vm2 = vcmask 1043456   ;;  %vm1505_vm7 = vcmask 523264   ;;  %s2515_s17 = sld [smem:[#allocation18_spill]] }
  0x24   : > { %v1826_v1 = vld [vmem:[%s2510_s18 + $0x18] sm:$0xff]  ;;  %v1828_v2 = vld [vmem:[%s2510_s18 + $0x28] sm:$0xff]  ;;  %716 = vmatpush.bf16.msra.mxu0 %v1824_v0  ;;  %v1823_v4 = vld [vmem:[%s2510_s18] sm:$0xff]  ;;  %s1671_s25 = sshll.u32 %s2208_s3, 3  ;;  %s2516_s27 = sld [smem:[#allocation20_spill]] }
  0x25   : > { %v1830_v3 = vld [vmem:[%s2510_s18 + $0x38] sm:$0xff]  ;;  %741 = vmatpush.bf16.msra.mxu1 %v1826_v1  ;;  %v1825_v5 = vld [vmem:[%s2510_s18 + $0x10] sm:$0xff]  ;;  %766 = vmatpush.bf16.msra.mxu2 %v1828_v2  ;;  %v1827_v6 = vld [vmem:[%s2510_s18 + $0x20] sm:$0xff]  ;;  %s646_s19 = scalar_lea.vmem %s2511_s22, %s1671_s25  ;;  %s650_s23 = scalar_lea.vmem %s2512_s24, %s1671_s25 }
  0x26   : > { %791 = vmatpush.bf16.msra.mxu3 %v1830_v3  ;;  %v1829_v7 = vld [vmem:[%s2510_s18 + $0x30] sm:$0xff]  ;;  %v1836_v10 = vld [vmem:[%s2465_s5 + $0x28] sm:$0xff]  ;;  %v2232_v12 = vld [vmem:[%s646_s19] sm:$0xff] }
  0x27   : > { %v660_v15 = vpack.c.bf16 %v2232_v12, %v2232_v12  ;;  %v1835_v16 = vld [vmem:[%s2465_s5 + $0x20] sm:$0xff]  ;;  %v1837_v17 = vld [vmem:[%s2465_s5 + $0x30] sm:$0xff]  ;;  %v1844_v20 = vld [vmem:[%s2467_s7 + $0x28] sm:$0xff]  ;;  %s653_s26 = scalar_lea.vmem %s2514_s1, %s2208_s3  ;;  %s637_s3 = sand.u32 1, %s2014_s30  }
  0x28   : > { %717 = vmatpush.bf16.msra.mxu0 %v1823_v4  ;;  %v656_v18 = vld [vmem:[%s650_s23] sm:$0xff]  ;;  %v1840_v21 = vld [vmem:[%s2467_s7 + $0x8] sm:$0xff]  ;;  %v1842_v22 = vld [vmem:[%s2467_s7 + $0x18] sm:$0xff]  ;;  %s1670_s28 = sshll.u32 %s637_s3, 3  ;;  %s2518_s1 = sld [smem:[#allocation19_spill]] }
  0x29   : > { %742 = vmatpush.bf16.msra.mxu1 %v1825_v5  ;;  %767 = vmatpush.bf16.msra.mxu2 %v1827_v6  ;;  %v661_v19 = vpack.c.bf16 %v656_v18, %v656_v18  ;;  %v1843_v23 = vld [vmem:[%s2467_s7 + $0x20] sm:$0xff]  ;;  %v1841_v25 = vld [vmem:[%s2467_s7 + $0x10] sm:$0xff]  ;;  %v1846_v26 = vld [vmem:[%s2467_s7 + $0x38] sm:$0xff]  ;;  %s1557_s25 = scalar_lea.sflag [#allocation3], %s637_s3 }
  0x2a   : > { %792 = vmatpush.bf16.msra.mxu3 %v1829_v7  ;;  %v1839_v24 = vld [vmem:[%s2467_s7] sm:$0xff]  ;;  %v1845_v27 = vld [vmem:[%s2467_s7 + $0x30] sm:$0xff]  ;;  %s1568_s0 = scalar_lea.hbm %s2516_s27, %s1820_s29 }
  0x2b   : > { %1681 = vmatmul.msk.bf16.vlgmr.msra.gmra.mxu0 %vm706_vm0, %v660_v15  ;;  %v1913_v34 = vld [vmem:[%s2466_s6] ss:$0 sm:$0xff]  ;;  %v1914_v35 = vld [vmem:[%s2466_s6 + $0x1] ss:$0 sm:$0xff]  ;;  %v1915_v46 = vld [vmem:[%s2466_s6 + $0x2] ss:$0 sm:$0xff] }
  0x2c   : > { %851 = vmatpush.bf16.msrb.mxu0 %v1832_v8  ;;  %1690 = vmatmul.msk.bf16.vlgmr.msra.gmra.mxu1 %vm706_vm0, %v660_v15  ;;  %v1910_v42 = vld [vmem:[%s2513_s4 + $0x1] ss:$0 sm:$0xff]  ;;  %v1909_v45 = vld [vmem:[%s2513_s4] ss:$0 sm:$0xff]  ;;  %v1916_v47 = vld [vmem:[%s2466_s6 + $0x3] ss:$0 sm:$0xff] }
  0x2d   : > { %876 = vmatpush.bf16.msrb.mxu1 %v1834_v9  ;;  %1699 = vmatmul.msk.bf16.vlgmr.msra.gmra.mxu2 %vm706_vm0, %v660_v15  ;;  %v1911_v59 = vld [vmem:[%s2513_s4 + $0x2] ss:$0 sm:$0xff]  ;;  %v1912_v60 = vld [vmem:[%s2513_s4 + $0x3] ss:$0 sm:$0xff]  ;;  %v1917_v8 = vld [vmem:[%s2468_s8] ss:$0 sm:$0xff] }
  0x2e   : > { %1708 = vmatmul.msk.bf16.vlgmr.msra.gmra.mxu3 %vm706_vm0, %v660_v15  ;;  %901 = vmatpush.bf16.msrb.mxu2 %v1836_v10  ;;  %v1918_v9 = vld [vmem:[%s2468_s8 + $0x1] ss:$0 sm:$0xff]  ;;  %v1919_v15 = vld [vmem:[%s2468_s8 + $0x2] ss:$0 sm:$0xff]  ;;  %s1572_s4 = sshll.u32 %s1568_s0, 4  ;;  %s1573_s4 = int_to_ptr.hbm [resolvable:$true] %s1572_s4 }
  0x2f   : > { %926 = vmatpush.bf16.msrb.mxu3 %v1838_v11  ;;  %s1966_s20 = sshra.s32 %s1573_s4, 4  ;;  %s1967_s20 = int_to_ptr.hbm [resolvable:$true] %s1966_s20 }
  0x30   : > { %852 = vmatpush.bf16.msrb.mxu0 %v1831_v13  ;;  %s1968_s29 = scalar_lea.hbm %s1967_s20, 8  ;;  %p1973_p1 = scmp.lt.s32.totalorder %s1967_s20, %s2516_s27 }
  0x31   : > { %877 = vmatpush.bf16.msrb.mxu1 %v1833_v14  ;;  %p1969_p12 = scmp.ne.s32.totalorder %s1967_s20, %s1968_s29 }
  0x32   : > { %902 = vmatpush.bf16.msrb.mxu2 %v1835_v16 }
  0x33   : > { %927 = vmatpush.bf16.msrb.mxu3 %v1837_v17  ;;  %p1970_p13 = pnand %p1969_p12, %p2173_p4 }
  0x34   : > { %983 = vmatpush.bf16.msra.mxu0 %v1840_v21 }
  0x35   : > { %1008 = vmatpush.bf16.msra.mxu1 %v1842_v22  ;;  %p1971_p0 = pneg %p1970_p13 }
  0x36   : > { %1033 = vmatpush.bf16.msra.mxu2 %v1844_v20 }
  0x37   : > { %1058 = vmatpush.bf16.msra.mxu3 %v1846_v26  ;;  %v1920_v26 = vld [vmem:[%s2468_s8 + $0x3] ss:$0 sm:$0xff] }
  0x38   : > { %984 = vmatpush.bf16.msra.mxu0 %v1839_v24 }
  0x39   : > { %1009 = vmatpush.bf16.msra.mxu1 %v1841_v25 }
  0x3a   : > { %1034 = vmatpush.bf16.msra.mxu2 %v1843_v23 }
  0x3b   : > { %1717 = vmatmul.msk.bf16.vlgmr.msrb.gmra.mxu0 %vm706_vm0, %v661_v19  ;;  %1059 = vmatpush.bf16.msra.mxu3 %v1845_v27 }
  0x3c   : > { %1726 = vmatmul.msk.bf16.vlgmr.msrb.gmra.mxu1 %vm706_vm0, %v661_v19 }
  0x3d   : > { %1735 = vmatmul.msk.bf16.vlgmr.msrb.gmra.mxu2 %vm706_vm0, %v661_v19 }
  0x3e   : > { %1744 = vmatmul.msk.bf16.vlgmr.msrb.gmra.mxu3 %vm706_vm0, %v661_v19 }
  0x4b   : > { %1753 = vmatmul.msk.bf16.vlgmr.msra.gmra.mxu0 %vm706_vm0, %v661_v19 }
  0x4c   : > { %1762 = vmatmul.msk.bf16.vlgmr.msra.gmra.mxu1 %vm706_vm0, %v661_v19 }
  0x4d   : > { %1771 = vmatmul.msk.bf16.vlgmr.msra.gmra.mxu2 %vm706_vm0, %v661_v19 }
  0x4e   : > { %1780 = vmatmul.msk.bf16.vlgmr.msra.gmra.mxu3 %vm706_vm0, %v661_v19 }
  0xa8   : > { %v719_v28 = vpop.f32.mrf.mxu0 }
  0xa9   : > { %v744_v29 = vpop.f32.mrf.mxu1  ;;  %v720_v53 = vadd.f32 %v1909_v45, %v719_v28 }
  0xaa   : > { %v745_v50 = vadd.f32 %v1910_v42, %v744_v29 }
  0xab   : > { %v1065_v63 = vpack.c.bf16 %v720_v53, %v720_v53 }
  0xac   : > { %v1066_v58 = vpack.c.bf16 %v745_v50, %v745_v50 }
  0xb0   : > { %v769_v30 = vpop.f32.mrf.mxu2  ;;  %v721_v32 = vpop.f32.mrf.mxu0 }
  0xb1   : > { %v794_v31 = vpop.f32.mrf.mxu3  ;;  %v746_v33 = vpop.f32.mrf.mxu1  ;;  %v770_v2 = vadd.f32 %v1911_v59, %v769_v30 }
  0xb2   : > { %v795_v3 = vadd.f32 %v1912_v60, %v794_v31  ;;  %v657_v33 = vld [vmem:[%s653_s26] sm:$0x1]  ;;  %s639_s26 = scalar_lea.vmem [#allocation2], %s1670_s28  ;;  %s1972_s28 = scalar_lea.hbm %s2516_s27, 16 }
  0xb3   : > { %v1067_v6 = vpack.c.bf16 %v770_v2, %v770_v2  ;;  %s1570_s21 = sshll.u32 %s639_s26, 4  ;;  %p1974_p2 = scmp.lt.s32.totalorder %s1972_s28, %s1968_s29  ;;  %s1571_s21 = int_to_ptr.vmem [resolvable:$true] %s1570_s21 }
  0xb4   : > { %v1068_v7 = vpack.c.bf16 %v795_v3, %v795_v3 }
  0xb5   : > { %p1975_p3 = por %p1974_p2, %p1973_p1 }
  0xb7   : > { %p1976_p5 = pnand %p1975_p3, %p1971_p0 }
  0xb8   : > { %v771_v36 = vpop.f32.mrf.mxu2  ;;  %v854_v38 = vpop.f32.mrf.mxu0 }
  0xb9   : > { %v796_v37 = vpop.f32.mrf.mxu3  ;;  %v879_v39 = vpop.f32.mrf.mxu1  ;;  %v855_v40 = vadd.f32 %v1913_v34, %v854_v38  ;;  %v658_v34 = vsub.f32 1.0, %v657_v33 }
  0xba   : > { %v880_v41 = vadd.f32 %v1914_v35, %v879_v39 }
  0xbb   : > { %v1069_v43 = vpack.c.bf16 %v855_v40, %v855_v40  ;;  %v659_v35 = vmul.f32 -10000.0, %v658_v34  ;;  %v1296_v34 = vld [vmem:[%s2469_s9 + $0x8] sm:$0xf] }
  0xbc   : > { %v1070_v44 = vpack.c.bf16 %v880_v41, %v880_v41 }
  0xbd   : > { %v1078_v48 = vsel %vm1073_vm1, %v1069_v43, 0  ;;  %v1155_v36 = vperm.slane %v659_v35, 0  ;;  %v1340_v35 = vsel %vm1216_vm2, %v1296_v34, 0  ;;  %v1849_v34 = vld [vmem:[%s2475_s15] sm:$0xff] }
  0xbe   : > { %v1097_v49 = vsel %vm1073_vm1, %v1070_v44, 0  ;;  %1087 = vmatpush.bf16.xpose.msrb.mxu0 %v1078_v48 }
  0xbf   : > { %1106 = vmatpush.bf16.xpose.msrb.mxu1 %v1097_v49 }
  0xc0   : > { %v904_v51 = vpop.f32.mrf.mxu2  ;;  %v856_v56 = vpop.f32.mrf.mxu0 }
  0xc1   : > { %v929_v52 = vpop.f32.mrf.mxu3  ;;  %v905_v54 = vadd.f32 %v1915_v46, %v904_v51  ;;  %v881_v57 = vpop.f32.mrf.mxu1 }
  0xc2   : > { %v930_v55 = vadd.f32 %v1916_v47, %v929_v52 }
  0xc3   : > { %v1071_v61 = vpack.c.bf16 %v905_v54, %v905_v54 }
  0xc4   : > { %v1072_v62 = vpack.c.bf16 %v930_v55, %v930_v55 }
  0xc5   : > { %v1116_v0 = vsel %vm1073_vm1, %v1071_v61, 0  ;;  %1781 = vmatmul.msk.bf16.vlgmr.msrb.gmra.mxu0 %vm1073_vm1, %v1065_v63 }
  0xc6   : > { %v1135_v1 = vsel %vm1073_vm1, %v1072_v62, 0  ;;  %1125 = vmatpush.bf16.xpose.msrb.mxu2 %v1116_v0  ;;  %1782 = vmatmul.msk.bf16.vlgmr.msrb.gmra.mxu1 %vm1073_vm1, %v1066_v58 }
  0xc7   : > { %1144 = vmatpush.bf16.xpose.msrb.mxu3 %v1135_v1 }
  0xc8   : > { %v906_v4 = vpop.f32.mrf.mxu2  ;;  %v986_v10 = vpop.f32.mrf.mxu0 }
  0xc9   : > { %v931_v5 = vpop.f32.mrf.mxu3  ;;  %v1011_v11 = vpop.f32.mrf.mxu1  ;;  %v987_v13 = vadd.f32 %v1917_v8, %v986_v10 }
  0xca   : > { %v1012_v14 = vadd.f32 %v1918_v9, %v1011_v11 }
  0xcb   : > { %v1209_v16 = vpack.c.bf16 %v987_v13, %v987_v13 }
  0xcc   : > { %v1210_v17 = vpack.c.bf16 %v1012_v14, %v1012_v14 }
  0xcd   : > { %1783 = vmatmul.msk.bf16.vlgmr.msrb.gmra.mxu2 %vm1073_vm1, %v1067_v6  ;;  %v1218_v19 = vsel %vm1216_vm2, %v1209_v16, 0 }
  0xce   : > { %1784 = vmatmul.msk.bf16.vlgmr.msrb.gmra.mxu3 %vm1073_vm1, %v1068_v7  ;;  %v1237_v20 = vsel %vm1216_vm2, %v1210_v17, 0  ;;  %1227 = vmatpush.bf16.msra.mxu0 %v1218_v19 }
  0xcf   : > { %1246 = vmatpush.bf16.msra.mxu1 %v1237_v20 }
  0xd0   : > { %v1036_v18 = vpop.f32.mrf.mxu2  ;;  %v988_v23 = vpop.f32.mrf.mxu0 }
  0xd1   : > { %v1037_v21 = vadd.f32 %v1919_v15, %v1036_v18  ;;  %v1013_v24 = vpop.f32.mrf.mxu1  ;;  %v1061_v27 = vpop.f32.mrf.mxu3 }
  0xd2   : > { %v1062_v29 = vadd.f32 %v1920_v26, %v1061_v27 }
  0xd3   : > { %v1211_v22 = vpack.c.bf16 %v1037_v21, %v1037_v21 }
  0xd4   : > { %v1212_v30 = vpack.c.bf16 %v1062_v29, %v1062_v29 }
  0xd5   : > { %v1256_v25 = vsel %vm1216_vm2, %v1211_v22, 0 }
  0xd6   : > { %1265 = vmatpush.bf16.msra.mxu2 %v1256_v25  ;;  %v1275_v31 = vsel %vm1216_vm2, %v1212_v30, 0  ;;  %v1294_v30 = vld [vmem:[%s2469_s9] sm:$0xf] }
  0xd7   : > { %1284 = vmatpush.bf16.msra.mxu3 %v1275_v31  ;;  %v1302_v31 = vsel %vm1216_vm2, %v1294_v30, 0 }
  0xd8   : > { %v1038_v28 = vpop.f32.mrf.mxu2  ;;  %1311 = vmatpush.bf16.msrb.mxu0 %v1302_v31  ;;  %v1852_v31 = vld [vmem:[%s2475_s15 + $0x18] sm:$0xff] }
  0xd9   : > { %v1063_v32 = vpop.f32.mrf.mxu3 }
  0xda   : > { %v1295_v32 = vld [vmem:[%s2469_s9 + $0x4] sm:$0xf]  ;;  %1349 = vmatpush.bf16.msrb.mxu2 %v1340_v35  ;;  %v1924_v35 = vld [vmem:[%s2474_s14] ss:$0 sm:$0xff] }
  0xdb   : > { %v1321_v33 = vsel %vm1216_vm2, %v1295_v32, 0  ;;  %v1851_v32 = vld [vmem:[%s2475_s15 + $0x10] sm:$0xff] }
  0xdc   : > { %1330 = vmatpush.bf16.msrb.mxu1 %v1321_v33  ;;  %v1850_v33 = vld [vmem:[%s2475_s15 + $0x8] sm:$0xff] }
 0x142   : > { %v1089_v37 = vpop.f32.mrf.mxu0 }
 0x143   : > { %v1108_v38 = vpop.f32.mrf.mxu1  ;;  %v1150_v39 = vmul.f32 0.35355338, %v1089_v37 }
 0x144   : > { %v1151_v41 = vmul.f32 0.35355338, %v1108_v38 }
 0x145   : > { %v1157_v40 = vadd.f32 %v1155_v36, %v1150_v39 }
 0x146   : > { %v1158_v45 = vadd.f32 %v1155_v36, %v1151_v41 }
 0x147   : > { %v1161_v42 = vsel %vm1073_vm1, %v1157_v40, -inf }
 0x148   : > { %1162 = vmax.xlane.f32.xlu1 %v1161_v42  ;;  %v1164_v49 = vsel %vm1073_vm1, %v1158_v45, -inf }
 0x14a   : > { %v1091_v43 = vpop.f32.mrf.mxu0 }
 0x14b   : > { %v1110_v44 = vpop.f32.mrf.mxu1 }
 0x150   : > { %v1127_v46 = vpop.f32.mrf.mxu2  ;;  %1165 = vmax.xlane.f32.xlu1 %v1164_v49 }
 0x151   : > { %v1146_v47 = vpop.f32.mrf.mxu3  ;;  %v1152_v48 = vmul.f32 0.35355338, %v1127_v46 }
 0x152   : > { %v1153_v51 = vmul.f32 0.35355338, %v1146_v47 }
 0x153   : > { %v1159_v50 = vadd.f32 %v1155_v36, %v1152_v48 }
 0x154   : > { %v1160_v55 = vadd.f32 %v1155_v36, %v1153_v51  ;;  %v1297_v36 = vld [vmem:[%s2469_s9 + $0xc] sm:$0xf] }
 0x155   : > { %v1167_v52 = vsel %vm1073_vm1, %v1159_v50, -inf  ;;  %v1359_v37 = vsel %vm1216_vm2, %v1297_v36, 0 }
 0x156   : > { %1168 = vmax.xlane.f32.xlu0 %v1167_v52  ;;  %v1170_v56 = vsel %vm1073_vm1, %v1160_v55, -inf  ;;  %1368 = vmatpush.bf16.msrb.mxu3 %v1359_v37 }
 0x158   : > { %v1129_v53 = vpop.f32.mrf.mxu2 }
 0x159   : > { %v1148_v54 = vpop.f32.mrf.mxu3 }
 0x15e   : > { %1171 = vmax.xlane.f32.xlu0 %v1170_v56 }
 0x1bb   : > { %v1163_v57 = vpop.xlane.xlu1 %1162 }
 0x1bc   : > { %v1173_v58 = vsub.f32 %v1157_v40, %v1163_v57  ;;  %v1921_v57 = vld [vmem:[%s2470_s10] ss:$0 sm:$0xff] }
 0x1be   : > { %v1177_v59 = vmul.f32 1.442695, %v1173_v58 }
 0x1c0   : > { %1928 = vpow2.f32 %v1177_v59 }
 0x1c3   : > { %v1166_v60 = vpop.xlane.xlu1 %1165 }
 0x1c4   : > { %v1174_v61 = vsub.f32 %v1158_v45, %v1166_v60 }
 0x1c6   : > { %v1929_v62 = vpop.eup %1928  ;;  %v1179_v63 = vmul.f32 1.442695, %v1174_v61 }
 0x1c7   : > { %v1185_v1 = vsel %vm1073_vm1, %v1929_v62, 0.0 }
 0x1c8   : > { %1930 = vpow2.f32 %v1179_v63  ;;  %1186 = vadd.xlane.f32.xlu0 %v1185_v1  ;;  %v2032_v1 = vmov 32.0  }
 0x1c9   : > { %v1169_v0 = vpop.xlane.xlu0 %1168 }
 0x1ca   : > { %v1175_v2 = vsub.f32 %v1159_v50, %v1169_v0 }
 0x1cc   : > { %v1181_v3 = vmul.f32 1.442695, %v1175_v2 }
 0x1ce   : > { %1932 = vpow2.f32 %v1181_v3  ;;  %v1931_v4 = vpop.eup %1930 }
 0x1cf   : > { %v1188_v6 = vsel %vm1073_vm1, %v1931_v4, 0.0 }
 0x1d0   : > { %1189 = vadd.xlane.f32.xlu1 %v1188_v6 }
 0x1d1   : > { %v1172_v5 = vpop.xlane.xlu0 %1171 }
 0x1d2   : > { %v1176_v7 = vsub.f32 %v1160_v55, %v1172_v5 }
 0x1d4   : > { %v1933_v8 = vpop.eup %1932  ;;  %v1183_v9 = vmul.f32 1.442695, %v1176_v7 }
 0x1d5   : > { %v1191_v10 = vsel %vm1073_vm1, %v1933_v8, 0.0 }
 0x1d6   : > { %1934 = vpow2.f32 %v1183_v9  ;;  %1192 = vadd.xlane.f32.xlu2 %v1191_v10 }
 0x1dc   : > { %v1935_v11 = vpop.eup %1934 }
 0x1dd   : > { %v1194_v13 = vsel %vm1073_vm1, %v1935_v11, 0.0 }
 0x1de   : > { %1195 = vadd.xlane.f32.xlu2 %v1194_v13  ;;  %v1848_v13 = vld [vmem:[%s2473_s13 + $0x8] sm:$0xff] }
 0x23b   : > { %v1187_v14 = vpop.xlane.xlu0 %1186 }
 0x23c   : > { %1936 = vrcp.f32 %v1187_v14  ;;  %v1847_v14 = vld [vmem:[%s2473_s13] sm:$0xff] }
 0x242   : > { %v1937_v15 = vpop.eup %1936 }
 0x243   : > { %v1201_v16 = vmul.f32 %v1937_v15, %v1929_v62  ;;  %v1190_v17 = vpop.xlane.xlu1 %1189 }
 0x244   : > { %1938 = vrcp.f32 %v1190_v17 }
 0x245   : > { %v1205_v18 = vpack.c.bf16 %v1201_v16, %v1201_v16 }
 0x247   : > { %1785 = vmatmul.msk.bf16.vlgmr.msra.gmra.mxu0 %vm1073_vm1, %v1205_v18 }
 0x248   : > { %1452 = vmatpush.bf16.msra.mxu0 %v1848_v13 }
 0x249   : > { %v1193_v19 = vpop.xlane.xlu2 %1192 }
 0x24a   : > { %1940 = vrcp.f32 %v1193_v19  ;;  %v1939_v20 = vpop.eup %1938 }
 0x24b   : > { %v1202_v21 = vmul.f32 %v1939_v20, %v1931_v4 }
 0x24c   : > { %1453 = vmatpush.bf16.msra.mxu0 %v1847_v14 }
 0x24d   : > { %v1206_v22 = vpack.c.bf16 %v1202_v21, %v1202_v21 }
 0x24f   : > { %1786 = vmatmul.msk.bf16.vlgmr.msra.gmra.mxu1 %vm1073_vm1, %v1206_v22 }
 0x250   : > { %v1941_v23 = vpop.eup %1940  ;;  %1513 = vmatpush.bf16.msra.mxu1 %v1852_v31 }
 0x251   : > { %v1203_v24 = vmul.f32 %v1941_v23, %v1933_v8  ;;  %v1196_v25 = vpop.xlane.xlu2 %1195 }
 0x252   : > { %1942 = vrcp.f32 %v1196_v25 }
 0x253   : > { %v1207_v26 = vpack.c.bf16 %v1203_v24, %v1203_v24  ;;  %1944 = vrcp.f32 %v2032_v1  ;;  %v1922_v24 = vld [vmem:[%s2471_s11] ss:$0 sm:$0xff] }
 0x254   : > { %1514 = vmatpush.bf16.msra.mxu1 %v1851_v32 }
 0x255   : > { %1787 = vmatmul.msk.bf16.vlgmr.msra.gmra.mxu2 %vm1073_vm1, %v1207_v26  ;;  %v1923_v26 = vld [vmem:[%s2472_s12] ss:$0 sm:$0xff] }
 0x258   : > { %v1943_v27 = vpop.eup %1942  ;;  %1515 = vmatpush.bf16.msra.mxu1 %v1850_v33 }
 0x259   : > { %v1204_v28 = vmul.f32 %v1943_v27, %v1935_v11  ;;  %v1945_v2 = vpop.eup %1944 }
 0x25a   : > { %v1389_v3 = vmul.f32 32.0, %v1945_v2  ;;  %vm1393_vm3 = vweird.f32 %v1945_v2 }
 0x25b   : > { %v1208_v29 = vpack.c.bf16 %v1204_v28, %v1204_v28 }
 0x25c   : > { %v1390_v4 = vsub.f32 1.0, %v1389_v3  ;;  %1516 = vmatpush.bf16.msra.mxu1 %v1849_v34 }
 0x25d   : > { %1788 = vmatmul.msk.bf16.vlgmr.msra.gmra.mxu3 %vm1073_vm1, %v1208_v29 }
 0x25e   : > { %v1391_v5 = vmul.f32 %v1945_v2, %v1390_v4 }
 0x260   : > { %v1392_v6 = vadd.f32 %v1945_v2, %v1391_v5  ;;  %v1926_v5 = vld [vmem:[%s2515_s17] ss:$0 sm:$0xff] }
 0x262   : > { %v2376_v7 = vsel %vm1393_vm3, %v1945_v2, %v1392_v6 }
 0x2c4   : > { %v1229_v38 = vpop.f32.mrf.mxu0 }
 0x2c5   : > { %v1290_v39 = vpack.c.bf16 %v1229_v38, %v1229_v38 }
 0x2c7   : > { %1789 = vmatmul.msk.bf16.vlgmr.msrb.gmra.mxu0 %vm1073_vm1, %v1290_v39 }
 0x2cc   : > { %v1231_v40 = vpop.f32.mrf.mxu0  ;;  %v1248_v41 = vpop.f32.mrf.mxu1 }
 0x2cd   : > { %v1291_v42 = vpack.c.bf16 %v1248_v41, %v1248_v41 }
 0x2cf   : > { %1790 = vmatmul.msk.bf16.vlgmr.msrb.gmra.mxu1 %vm1073_vm1, %v1291_v42 }
 0x2d4   : > { %v1250_v43 = vpop.f32.mrf.mxu1 }
 0x2d8   : > { %v1267_v44 = vpop.f32.mrf.mxu2 }
 0x2d9   : > { %v1292_v45 = vpack.c.bf16 %v1267_v44, %v1267_v44 }
 0x2db   : > { %1791 = vmatmul.msk.bf16.vlgmr.msrb.gmra.mxu2 %vm1073_vm1, %v1292_v45 }
 0x2e0   : > { %v1269_v46 = vpop.f32.mrf.mxu2  ;;  %v1286_v47 = vpop.f32.mrf.mxu3 }
 0x2e1   : > { %v1293_v48 = vpack.c.bf16 %v1286_v47, %v1286_v47 }
 0x2e3   : > { %1792 = vmatmul.msk.bf16.vlgmr.msrb.gmra.mxu3 %vm1073_vm1, %v1293_v48 }
 0x2e8   : > { %v1288_v49 = vpop.f32.mrf.mxu3 }
 0x2e9   : > { %v1925_v49 = vld [vmem:[%s2476_s16] ss:$0 sm:$0xff] }
 0x344   : > { %v1313_v50 = vpop.f32.mrf.mxu0 }
 0x34c   : > { %v1315_v51 = vpop.f32.mrf.mxu0  ;;  %v1332_v52 = vpop.f32.mrf.mxu1 }
 0x34d   : > { %v1374_v55 = vadd.f32 %v1332_v52, %v1313_v50 }
 0x354   : > { %v1334_v53 = vpop.f32.mrf.mxu1 }
 0x35e   : > { %v1351_v54 = vpop.f32.mrf.mxu2 }
 0x35f   : > { %v1375_v56 = vadd.f32 %v1374_v55, %v1351_v54 }
 0x366   : > { %v1353_v58 = vpop.f32.mrf.mxu2  ;;  %v1370_v59 = vpop.f32.mrf.mxu3 }
 0x367   : > { %v1376_v60 = vadd.f32 %v1375_v56, %v1370_v59 }
 0x369   : > { %v1381_v61 = vadd.f32 %v1921_v57, %v1376_v60 }
 0x36b   : > { %v1382_v62 = vadd.f32 %v1381_v61, %v2232_v12 }
 0x36d   : > { %v1385_v63 = vsel %vm706_vm0, %v1382_v62, 0.0 }
 0x36e   : > { %v1372_v0 = vpop.f32.mrf.mxu3  ;;  %1386 = vadd.xlane.f32.xlu2 %v1385_v63 }
 0x3e1   : > { %v1387_v8 = vpop.xlane.xlu2 %1386 }
 0x3e2   : > { %v1395_v9 = vmul.f32 %v2376_v7, %v1387_v8  ;;  %v1927_v8 = vld [vmem:[%s2518_s1] ss:$0 sm:$0xff] }
 0x3e4   : > { %v1396_v10 = vsub.f32 %v1382_v62, %v1395_v9 }
 0x3e6   : > { %v1397_v11 = vmul.f32 %v1396_v10, %v1396_v10 }
 0x3e8   : > { %v1398_v12 = vsel %vm706_vm0, %v1397_v11, 0.0 }
 0x3e9   : > { %1399 = vadd.xlane.f32.xlu0 %v1398_v12 }
 0x45c   : > { %v1400_v15 = vpop.xlane.xlu0 %1399 }
 0x45d   : > { %v1401_v16 = vmul.f32 %v1400_v15, %v2376_v7 }
 0x45f   : > { %v1402_v17 = vadd.f32 1e-12, %v1401_v16 }
 0x461   : > { %1946 = vrsqrt.f32 %v1402_v17  ;;  %vm1409_vm5 = vweird.f32 %v1402_v17 }
 0x467   : > { %v1947_v18 = vpop.eup %1946 }
 0x468   : > { %v1404_v19 = vmul.f32 %v1947_v18, %v1402_v17  ;;  %vm1410_vm4 = vweird.f32 %v1947_v18 }
 0x469   : > { %vm1411_vm6 = vmor %vm1409_vm5, %vm1410_vm4 }
 0x46a   : > { %v1405_v20 = vmul.f32 %v1947_v18, %v1404_v19 }
 0x46c   : > { %v1406_v21 = vmul.f32 0.5, %v1405_v20 }
 0x46e   : > { %v1407_v22 = vsub.f32 1.5, %v1406_v21 }
 0x470   : > { %v1408_v23 = vmul.f32 %v1947_v18, %v1407_v22 }
 0x472   : > { %v1412_v25 = vsel %vm1411_vm6, %v1947_v18, %v1408_v23 }
 0x473   : > { %v1413_v27 = vmul.f32 %v1412_v25, %v1396_v10 }
 0x475   : > { %v1417_v28 = vmul.f32 %v1922_v24, %v1413_v27 }
 0x477   : > { %v1421_v29 = vadd.f32 %v1923_v26, %v1417_v28 }
 0x479   : > { %v1422_v30 = vpack.c.bf16 %v1421_v29, %v1421_v29 }
 0x47b   : > { %1801 = vmatmul.msk.bf16.vlgmr.msra.gmra.mxu0 %vm706_vm0, %v1422_v30 }
 0x4f8   : > { %v1455_v36 = vpop.f32.mrf.mxu0 }
 0x4f9   : > { %v1456_v37 = vadd.f32 %v1924_v35, %v1455_v36 }
 0x4fb   : > { %v1460_v38 = vmul.f32 %v1456_v37, %v1456_v37  ;;  %v1459_v45 = vmul.f32 0.5, %v1456_v37 }
 0x4fd   : > { %v1461_v39 = vmul.f32 %v1460_v38, %v1456_v37 }
 0x4ff   : > { %v1462_v40 = vmul.f32 0.044715, %v1461_v39 }
 0x500   : > { %v1457_v41 = vpop.f32.mrf.mxu0 }
 0x501   : > { %v1463_v42 = vadd.f32 %v1462_v40, %v1456_v37 }
 0x503   : > { %v1464_v43 = vmul.f32 0.7978846, %v1463_v42 }
 0x505   : > { %1948 = vtanh.f32 %v1464_v43 }
 0x50b   : > { %v1949_v44 = vpop.eup %1948 }
 0x50c   : > { %v1466_v46 = vadd.f32 1.0, %v1949_v44 }
 0x50e   : > { %v1467_v47 = vmul.f32 %v1466_v46, %v1459_v45 }
 0x510   : > { %v1468_v48 = vpack.c.bf16 %v1467_v47, %v1467_v47 }
 0x512   : > { %1818 = vmatmul.msk.bf16.vlgmr.msra.gmra.mxu1 %vm1505_vm7, %v1468_v48 }
 0x58f   : > { %v1518_v50 = vpop.f32.mrf.mxu1 }
 0x590   : > { %v1519_v51 = vadd.f32 %v1925_v49, %v1518_v50 }
 0x592   : > { %v1522_v52 = vadd.f32 %v1519_v51, %v1421_v29 }
 0x594   : > { %v1525_v53 = vsel %vm706_vm0, %v1522_v52, 0.0 }
 0x595   : > { %1526 = vadd.xlane.f32.xlu1 %v1525_v53 }
 0x597   : > { %v1520_v54 = vpop.f32.mrf.mxu1 }
 0x608   : > { %v1527_v55 = vpop.xlane.xlu1 %1526 }
 0x609   : > { %v1528_v56 = vmul.f32 %v1527_v55, %v2376_v7 }
 0x60b   : > { %v1529_v57 = vsub.f32 %v1522_v52, %v1528_v56 }
 0x60d   : > { %v1530_v58 = vmul.f32 %v1529_v57, %v1529_v57 }
 0x60f   : > { %v1531_v59 = vsel %vm706_vm0, %v1530_v58, 0.0 }
 0x610   : > { %1532 = vadd.xlane.f32.xlu2 %v1531_v59 }
 0x683   : > { %v1533_v60 = vpop.xlane.xlu2 %1532 }
 0x684   : > { %v1534_v61 = vmul.f32 %v1533_v60, %v2376_v7 }
 0x686   : > { %v1535_v62 = vadd.f32 1e-12, %v1534_v61 }
 0x688   : > { %1950 = vrsqrt.f32 %v1535_v62  ;;  %vm1542_vm9 = vweird.f32 %v1535_v62 }
 0x68e   : > { %v1951_v63 = vpop.eup %1950 }
 0x68f   : > { %v1537_v0 = vmul.f32 %v1951_v63, %v1535_v62  ;;  %vm1543_vm8 = vweird.f32 %v1951_v63 }
 0x690   : > { %vm1544_vm10 = vmor %vm1542_vm9, %vm1543_vm8 }
 0x691   : > { %v1538_v1 = vmul.f32 %v1951_v63, %v1537_v0 }
 0x693   : > { %v1539_v2 = vmul.f32 0.5, %v1538_v1 }
 0x695   : > { %v1540_v3 = vsub.f32 1.5, %v1539_v2 }
 0x697   : > { %v1541_v4 = vmul.f32 %v1951_v63, %v1540_v3 }
 0x699   : > { %v1545_v6 = vsel %vm1544_vm10, %v1951_v63, %v1541_v4 }
 0x69a   : > { %v1546_v7 = vmul.f32 %v1545_v6, %v1529_v57 }
 0x69c   : > { %v1550_v9 = vmul.f32 %v1926_v5, %v1546_v7 }
 0x69e   : > { %v1554_v10 = vadd.f32 %v1927_v8, %v1550_v9 }
 0x6a0   : > { %1555 = vst.msk [vmem:[%s639_s26] sm:$0xff] %vm706_vm0, %v1554_v10 }
 0x6a1   : > { %1979 = shalt.err (!%p1976_p5)
}
 0x6a2   : > { %1853 = dma.vmem_to_hbm [thread:$0]  (%p2173_p4), %s1571_s21, 128, %s1573_s4, %s1557_s25  }
 0x6a3 PF: > { %s2519_s3 = sld [smem:[#allocation8_spill]] }
 0x6a4   : > { %s2520_s24 = sld [smem:[#allocation5_spill]] }
 0x6a9   : > { %p1859_p6 = scmp.ge.s32.totalorder %s2519_s3, 2 }
 0x6aa   : > { %s1584_s1 = sand.u32 1, %s2520_s24  }
 0x6ab   : > { %p1856_p7 = pnand %p1859_p6, %p2180_p8  ;;  %s1585_s26 = scalar_lea.sflag [#allocation3], %s1584_s1 }
 0x6ad   : > { %p1857_p9 = pneg %p1856_p7 }
 0x6af   : > { %2005 = dma.done.wait (%p1857_p9), %s1585_s26, 128  }
 0x6b0   : > { %2007 = vsyncadd (%p1857_p9), %s1585_s26, 4294967168  ;;  %s32_s22 = sadd.s32 1, %s2519_s3   ;;  %s2522_s20 = sld [smem:[#allocation6_spill]] }
 0x6b1   : > { %p29_p10 = scmp.ge.s32.totalorder %s32_s22, 4   ;;  %s2523_s29 = sld [smem:[#allocation12_spill]] }
 0x6b2   : > { %s2524_s21 = sld [smem:[#allocation7_spill]]  ;;  %s2526_s0 = smov %s2014_s30 }
 0x6b3   : > { %s2525_s1 = sld [smem:[#allocation9_spill]]  ;;  %31 = sbr.rel (!%p29_p10) target bundleno = 13 (0xd), region = 137 }
 0x6b6   : > { %s2527_s30 = smov %s2522_s20 }
 0x6b7   : > { %s2528_s20 = smov %s2523_s29 }
 0x6b8   :  { %1591 = vsyncpa [#allocation3], 1 }
 0x6b9   :  { %1593 = vsyncpa [#allocation3 + $0x1], 1 }

</bundles_post_ra>
